<compile_context>
chip_gen: v7x
topology: tpu7x:2x2x1
jax: 0.10.0
libtpu: 0.0.40
codegen_flags: <defaults>
</compile_context>

<pallas_src>
import functools

import jax
import jax.numpy as jnp
from jax.experimental import pallas as pl
from jax.experimental.pallas import tpu as pltpu


def _transformer_rul_kernel(
    x_ref, add_ref, mask_ref,
    w_in_ref, wqkv_ref, bqkv_ref, wo_ref,
    wf1_ref, bf1_ref, wf2_ref,
    lvec_ref, hmat_ref, hvec_ref, br2_ref,
    out_ref,
    *, batch, seq, nhead,
):
    N, _ = x_ref.shape                 # N = batch * seq
    D = w_in_ref.shape[1]
    L = wqkv_ref.shape[0]
    Dh = D // nhead
    eps = 1e-5
    bf16 = jnp.bfloat16

    def mm(a, b):
        # MXU matmul: bf16 operands, f32 accumulation.
        return jnp.dot(a.astype(bf16), b.astype(bf16),
                       preferred_element_type=jnp.float32)

    def mm_nt(a, b):
        # a (M, K) @ b (N, K)^T -> (M, N), contracting last dims of both.
        return jax.lax.dot_general(
            a.astype(bf16), b.astype(bf16),
            dimension_numbers=(((1,), (1,)), ((), ())),
            preferred_element_type=jnp.float32)

    def layernorm(z, gamma, beta):
        mu = jnp.mean(z, axis=-1, keepdims=True)
        var = jnp.mean((z - mu) ** 2, axis=-1, keepdims=True)
        return (z - mu) * jax.lax.rsqrt(var + eps) * gamma + beta

    mask = mask_ref[...]               # (N, N) block-diagonal additive mask

    # --- input projection + (positional encoding + input bias), flattened ---
    h2 = mm(x_ref[...], w_in_ref[...]) + add_ref[...]            # (N, D) f32

    # --- transformer encoder layers (post-LN, ReLU FFN, dropout=identity) ---
    for l in range(L):
        lv = lvec_ref[l]               # (6, D): [bo, bf2, g1, bt1, g2, bt2]
        bo_row, bf2_row = lv[0:1], lv[1:2]
        g1_row, bt1_row = lv[2:3], lv[3:4]
        g2_row, bt2_row = lv[4:5], lv[5:6]

        # One merged QKV projection (scale already folded into Wq / bq).
        qkv = mm(h2, wqkv_ref[l]) + bqkv_ref[l]                  # (N, 3D)

        # Flat per-head attention over the B*S axis with block-diag mask.
        heads = []
        for hh in range(nhead):
            q = qkv[:, hh * Dh:(hh + 1) * Dh]                    # (N, Dh)
            k = qkv[:, D + hh * Dh:D + (hh + 1) * Dh]
            v = qkv[:, 2 * D + hh * Dh:2 * D + (hh + 1) * Dh]
            s = mm_nt(q, k) + mask                               # (N, N)
            s = s - jnp.max(s, axis=-1, keepdims=True)
            p = jnp.exp(s)
            p = p * pl.reciprocal(jnp.sum(p, axis=-1, keepdims=True),
                                  approx=True)
            heads.append(mm(p, v))                               # (N, Dh)
        o_cat = jnp.concatenate(heads, axis=-1)                  # (N, D)
        attn2 = mm(o_cat, wo_ref[l]) + bo_row                    # (N, D)

        h2 = layernorm(h2 + attn2, g1_row, bt1_row)

        # Feed-forward network.
        ff = jnp.maximum(mm(h2, wf1_ref[l]) + bf1_ref[l], 0.0)   # (N, Dff)
        ff = mm(ff, wf2_ref[l]) + bf2_row                        # (N, D)
        h2 = layernorm(h2 + ff, g2_row, bt2_row)

    # --- attention pooling over the sequence axis ----------------------------
    ba1_row = hvec_ref[0:1]            # (1, D)
    wa2_row = hvec_ref[1:2]            # (1, D)
    br1_row = hvec_ref[2:3]            # (1, D), zero-padded past D//2
    wr2_row = hvec_ref[3:4]            # (1, D), zero-padded past D//2

    a2 = jnp.tanh(mm(h2, hmat_ref[0]) + ba1_row)                 # (N, D)
    h3 = h2.reshape(batch, seq, D)
    a3 = a2.reshape(batch, seq, D)
    # NOTE: the scalar pooling-score bias cancels inside the softmax over the
    # sequence axis, so it is omitted (exact).
    sc = jnp.sum(a3 * wa2_row, axis=-1, keepdims=True)           # (B, S, 1)
    sc = sc - jnp.max(sc, axis=1, keepdims=True)
    pw = jnp.exp(sc)
    pw = pw * pl.reciprocal(jnp.sum(pw, axis=1, keepdims=True), approx=True)
    ctx = jnp.sum(pw * h3, axis=1)                               # (B, D)

    # --- regressor head -------------------------------------------------------
    # wr1 is zero-padded to (D, D); padded columns give relu(0) = 0 and are
    # multiplied by zero-padded wr2 entries, so the result is exact.
    r = jnp.maximum(mm(ctx, hmat_ref[1]) + br1_row, 0.0)         # (B, D)
    out = jnp.sum(r * wr2_row, axis=-1, keepdims=True) + br2_ref[0]
    out_ref[...] = out                                           # (B, 1)


def prepare_params(params, *, batch, seq, nhead):
    """One-time, input-independent parameter packing (hoisted out of the
    per-call path)."""
    (pos, w_in, b_in,
     wqkv, bqkv, wo, bo,
     g1, bt1, wf1, bf1, wf2, bf2, g2, bt2,
     wa1, ba1, wa2, ba2,
     wr1, br1, wr2, br2) = params

    D = w_in.shape[1]
    L = wqkv.shape[0]
    Dh = D // nhead
    Dff = wf1.shape[2]
    H2 = D // 2
    N = batch * seq
    bf16 = jnp.bfloat16
    scale = 1.0 / (Dh ** 0.5)

    # Positional encoding tiled over batch, fused with the input-proj bias.
    add = jnp.tile(pos[:seq], (batch, 1)) + b_in                 # (N, D)

    # Fold 1/sqrt(Dh) into the q columns / q bias of the merged QKV weights.
    qkv_scale = jnp.concatenate([jnp.full((D,), scale, jnp.float32),
                                 jnp.ones((2 * D,), jnp.float32)])
    wqkv_p = (wqkv * qkv_scale[None, None, :]).astype(bf16)      # (L, D, 3D)
    bqkv_p = (bqkv * qkv_scale[None, :]).reshape(L, 1, 3 * D)    # (L, 1, 3D)

    wo_b = wo.astype(bf16)                                       # (L, D, D)
    wf1_b = wf1.astype(bf16)                                     # (L, D, Dff)
    wf2_b = wf2.astype(bf16)                                     # (L, Dff, D)
    bf1_p = bf1.reshape(L, 1, Dff)
    lvec = jnp.stack([bo, bf2, g1, bt1, g2, bt2], axis=1)        # (L, 6, D)

    wr1_pad = jnp.pad(wr1, ((0, 0), (0, D - H2)))
    hmat = jnp.stack([wa1, wr1_pad], axis=0).astype(bf16)        # (2, D, D)
    hvec = jnp.stack([ba1.reshape(D), wa2.reshape(D),
                      jnp.pad(br1.reshape(H2), (0, D - H2)),
                      jnp.pad(wr2.reshape(H2), (0, D - H2))], axis=0)  # (4, D)
    br2_s = br2.reshape(1)                                       # scalar -> SMEM
    _ = ba2  # cancels in the pooling softmax; intentionally unused

    # Block-diagonal additive attention mask over the flattened B*S axis.
    row_b = jnp.arange(N, dtype=jnp.int32) // seq
    mask = jnp.where(row_b[:, None] == row_b[None, :],
                     0.0, -1e30).astype(jnp.float32)             # (N, N)

    return (add, mask, w_in.astype(bf16), wqkv_p, bqkv_p, wo_b,
            wf1_b, bf1_p, wf2_b, lvec, hmat, hvec, br2_s)


def transformer_rul_forward(x, packed, *, nhead):
    """x: (B, S, input_dim) float32 -> (B,) float32 (eval-mode forward)."""
    (add, mask, w_in_b, wqkv_p, bqkv_p, wo_b,
     wf1_b, bf1_p, wf2_b, lvec, hmat, hvec, br2_s) = packed

    B, S, F = x.shape
    N = B * S
    x2 = x.reshape(N, F)

    kernel = functools.partial(_transformer_rul_kernel,
                               batch=B, seq=S, nhead=nhead)
    vmem = pl.BlockSpec(memory_space=pltpu.MemorySpace.VMEM)
    smem = pl.BlockSpec(memory_space=pltpu.MemorySpace.SMEM)
    out = pl.pallas_call(
        kernel,
        out_shape=jax.ShapeDtypeStruct((B, 1), jnp.float32),
        in_specs=[vmem] * 13 + [smem],
        out_specs=vmem,
    )(x2, add, mask, w_in_b, wqkv_p, bqkv_p, wo_b,
      wf1_b, bf1_p, wf2_b, lvec, hmat, hvec, br2_s)
    return out[:, 0]


def make_positional_encoding(seq_len, d_model):
    position = jnp.arange(seq_len, dtype=jnp.float32)[:, None]
    div_term = jnp.exp(jnp.arange(0, d_model, 2, dtype=jnp.float32)
                       * (-jnp.log(10000.0) / d_model))
    pe = jnp.zeros((seq_len, d_model), dtype=jnp.float32)
    pe = pe.at[:, 0::2].set(jnp.sin(position * div_term))
    pe = pe.at[:, 1::2].set(jnp.cos(position * div_term))
    return pe


def init_params(key, *, input_dim, d_model, num_layers, dim_feedforward, seq_len):
    """Deterministic synthetic parameters (not a checkpoint load)."""
    keys = iter(jax.random.split(key, 64))

    def rand(shape, scale=0.1):
        return scale * jax.random.normal(next(keys), shape, dtype=jnp.float32)

    L, D, F, Dff = num_layers, d_model, input_dim, dim_feedforward

    pos = make_positional_encoding(seq_len, D)                   # (S, D)
    w_in, b_in = rand((F, D)), rand((1, D))

    wqkv = rand((L, D, 3 * D))
    bqkv = rand((L, 3 * D))
    wo = rand((L, D, D))
    bo = rand((L, D))
    g1 = jnp.ones((L, D), jnp.float32)
    bt1 = jnp.zeros((L, D), jnp.float32)
    wf1 = rand((L, D, Dff))
    bf1 = rand((L, Dff))
    wf2 = rand((L, Dff, D))
    bf2 = rand((L, D))
    g2 = jnp.ones((L, D), jnp.float32)
    bt2 = jnp.zeros((L, D), jnp.float32)

    wa1, ba1 = rand((D, D)), rand((1, D))
    wa2, ba2 = rand((D, 1)), rand((1, 1))

    wr1, br1 = rand((D, D // 2)), rand((1, D // 2))
    wr2, br2 = rand((D // 2, 1)), rand((1, 1))

    return (pos, w_in, b_in,
            wqkv, bqkv, wo, bo,
            g1, bt1, wf1, bf1, wf2, bf2, g2, bt2,
            wa1, ba1, wa2, ba2,
            wr1, br1, wr2, br2)


if __name__ == "__main__":
    # Small shapes consistent with the module's forward.
    B, S = 2, 8
    INPUT_DIM = 6
    D_MODEL = 32
    NHEAD = 4
    NUM_LAYERS = 2
    DIM_FF = 64

    key = jax.random.PRNGKey(0)
    kx, kp = jax.random.split(key)
    x = jax.random.normal(kx, (B, S, INPUT_DIM), dtype=jnp.float32)

    params = init_params(
        kp,
        input_dim=INPUT_DIM,
        d_model=D_MODEL,
        num_layers=NUM_LAYERS,
        dim_feedforward=DIM_FF,
        seq_len=S,
    )

    # One-time packing (hoisted out of the per-call path).
    packed = prepare_params(params, batch=B, seq=S, nhead=NHEAD)
    packed = jax.block_until_ready(packed)

    out = transformer_rul_forward(x, packed, nhead=NHEAD)
    out = jax.block_until_ready(out)
    assert out.shape == (B,)
    assert bool(jnp.all(jnp.isfinite(out)))
    print("KERNEL_OK")
</pallas_src>

<mosaic_0001>
module attributes {stable_mosaic.version = 11 : i64} {
  func.func @_transformer_rul_kernel(%arg0: memref<16x6xf32, #tpu.memory_space<vmem>>, %arg1: memref<16x32xf32, #tpu.memory_space<vmem>>, %arg2: memref<16x16xf32, #tpu.memory_space<vmem>>, %arg3: memref<6x32xbf16, #tpu.memory_space<vmem>>, %arg4: memref<2x32x96xbf16, #tpu.memory_space<vmem>>, %arg5: memref<2x1x96xf32, #tpu.memory_space<vmem>>, %arg6: memref<2x32x32xbf16, #tpu.memory_space<vmem>>, %arg7: memref<2x32x64xbf16, #tpu.memory_space<vmem>>, %arg8: memref<2x1x64xf32, #tpu.memory_space<vmem>>, %arg9: memref<2x64x32xbf16, #tpu.memory_space<vmem>>, %arg10: memref<2x6x32xf32, #tpu.memory_space<vmem>>, %arg11: memref<2x32x32xbf16, #tpu.memory_space<vmem>>, %arg12: memref<4x32xf32, #tpu.memory_space<vmem>>, %arg13: memref<1xf32, #tpu.memory_space<smem>>, %arg14: memref<2x1xf32, #tpu.memory_space<vmem>>) attributes {dimension_semantics = [], scalar_prefetch = 0 : i64, scratch_operands = 0 : i64, tpu.core_type = #tpu.core_type<tc>} {
    %c0 = arith.constant 0 : index
    %c0_0 = arith.constant 0 : index
    %0 = vector.load %arg2[%c0, %c0_0] : memref<16x16xf32, #tpu.memory_space<vmem>>, vector<16x16xf32>
    %c0_1 = arith.constant 0 : index
    %c0_2 = arith.constant 0 : index
    %1 = vector.load %arg0[%c0_1, %c0_2] : memref<16x6xf32, #tpu.memory_space<vmem>>, vector<16x6xf32>
    %c0_3 = arith.constant 0 : index
    %c0_4 = arith.constant 0 : index
    %2 = vector.load %arg3[%c0_3, %c0_4] : memref<6x32xbf16, #tpu.memory_space<vmem>>, vector<6x32xbf16>
    %3 = arith.truncf %1 : vector<16x6xf32> to vector<16x6xbf16>
    %cst = arith.constant dense<0.000000e+00> : vector<16x32xf32>
    %4 = tpu.matmul %3, %2, %cst {dimension_numbers = #tpu.dot_dimension_numbers<[1], [0], [0], [1], [0, 0, 1, 1], [], []>} : vector<16x6xbf16>, vector<6x32xbf16>, vector<16x32xf32> -> vector<16x32xf32>
    %c0_5 = arith.constant 0 : index
    %c0_6 = arith.constant 0 : index
    %5 = vector.load %arg1[%c0_5, %c0_6] : memref<16x32xf32, #tpu.memory_space<vmem>>, vector<16x32xf32>
    %6 = arith.addf %4, %5 : vector<16x32xf32>
    %c0_7 = arith.constant 0 : index
    %c0_8 = arith.constant 0 : index
    %c0_9 = arith.constant 0 : index
    %7 = vector.load %arg10[%c0_7, %c0_8, %c0_9] : memref<2x6x32xf32, #tpu.memory_space<vmem>>, vector<1x6x32xf32>
    %8 = vector.shape_cast %7 : vector<1x6x32xf32> to vector<6x32xf32>
    %9 = vector.extract_strided_slice %8 {offsets = [0, 0], sizes = [1, 32], strides = [1, 1]} : vector<6x32xf32> to vector<1x32xf32>
    %10 = vector.extract_strided_slice %8 {offsets = [1, 0], sizes = [1, 32], strides = [1, 1]} : vector<6x32xf32> to vector<1x32xf32>
    %11 = vector.extract_strided_slice %8 {offsets = [2, 0], sizes = [1, 32], strides = [1, 1]} : vector<6x32xf32> to vector<1x32xf32>
    %12 = vector.extract_strided_slice %8 {offsets = [3, 0], sizes = [1, 32], strides = [1, 1]} : vector<6x32xf32> to vector<1x32xf32>
    %13 = vector.extract_strided_slice %8 {offsets = [4, 0], sizes = [1, 32], strides = [1, 1]} : vector<6x32xf32> to vector<1x32xf32>
    %14 = vector.extract_strided_slice %8 {offsets = [5, 0], sizes = [1, 32], strides = [1, 1]} : vector<6x32xf32> to vector<1x32xf32>
    %c0_10 = arith.constant 0 : index
    %c0_11 = arith.constant 0 : index
    %c0_12 = arith.constant 0 : index
    %15 = vector.load %arg4[%c0_10, %c0_11, %c0_12] : memref<2x32x96xbf16, #tpu.memory_space<vmem>>, vector<1x32x96xbf16>
    %16 = vector.shape_cast %15 : vector<1x32x96xbf16> to vector<32x96xbf16>
    %17 = arith.truncf %6 : vector<16x32xf32> to vector<16x32xbf16>
    %cst_13 = arith.constant dense<0.000000e+00> : vector<16x96xf32>
    %18 = tpu.matmul %17, %16, %cst_13 {dimension_numbers = #tpu.dot_dimension_numbers<[1], [0], [0], [1], [0, 0, 1, 1], [], []>} : vector<16x32xbf16>, vector<32x96xbf16>, vector<16x96xf32> -> vector<16x96xf32>
    %c0_14 = arith.constant 0 : index
    %c0_15 = arith.constant 0 : index
    %c0_16 = arith.constant 0 : index
    %19 = vector.load %arg5[%c0_14, %c0_15, %c0_16] : memref<2x1x96xf32, #tpu.memory_space<vmem>>, vector<1x1x96xf32>
    %20 = vector.shape_cast %19 : vector<1x1x96xf32> to vector<1x96xf32>
    %21 = vector.broadcast %20 : vector<1x96xf32> to vector<16x96xf32>
    %22 = arith.addf %18, %21 : vector<16x96xf32>
    %23 = vector.extract_strided_slice %22 {offsets = [0, 0], sizes = [16, 8], strides = [1, 1]} : vector<16x96xf32> to vector<16x8xf32>
    %24 = vector.extract_strided_slice %22 {offsets = [0, 32], sizes = [16, 8], strides = [1, 1]} : vector<16x96xf32> to vector<16x8xf32>
    %25 = vector.extract_strided_slice %22 {offsets = [0, 64], sizes = [16, 8], strides = [1, 1]} : vector<16x96xf32> to vector<16x8xf32>
    %26 = arith.truncf %23 : vector<16x8xf32> to vector<16x8xbf16>
    %27 = arith.truncf %24 : vector<16x8xf32> to vector<16x8xbf16>
    %cst_17 = arith.constant dense<0.000000e+00> : vector<16x16xf32>
    %28 = tpu.matmul %26, %27, %cst_17 {dimension_numbers = #tpu.dot_dimension_numbers<[1], [1], [0], [0], [0, 0, 1, 0], [], []>} : vector<16x8xbf16>, vector<16x8xbf16>, vector<16x16xf32> -> vector<16x16xf32>
    %29 = arith.addf %28, %0 : vector<16x16xf32>
    %cst_18 = arith.constant dense<0xFF800000> : vector<16xf32>
    %30 = vector.multi_reduction <maximumf>, %29, %cst_18 [1] : vector<16x16xf32> to vector<16xf32>
    %31 = vector.shape_cast %30 : vector<16xf32> to vector<16x1xf32>
    %32 = vector.broadcast %31 : vector<16x1xf32> to vector<16x16xf32>
    %33 = arith.subf %29, %32 : vector<16x16xf32>
    %34 = math.exp %33 : vector<16x16xf32>
    %cst_19 = arith.constant dense<0.000000e+00> : vector<16xf32>
    %35 = vector.multi_reduction <add>, %34, %cst_19 [1] : vector<16x16xf32> to vector<16xf32>
    %36 = vector.shape_cast %35 : vector<16xf32> to vector<16x1xf32>
    %37 = tpu.reciprocal %36 {approx = true} : vector<16x1xf32> -> vector<16x1xf32>
    %38 = vector.broadcast %37 : vector<16x1xf32> to vector<16x16xf32>
    %39 = arith.mulf %34, %38 : vector<16x16xf32>
    %40 = arith.truncf %39 : vector<16x16xf32> to vector<16x16xbf16>
    %41 = arith.truncf %25 : vector<16x8xf32> to vector<16x8xbf16>
    %cst_20 = arith.constant dense<0.000000e+00> : vector<16x8xf32>
    %42 = tpu.matmul %40, %41, %cst_20 {dimension_numbers = #tpu.dot_dimension_numbers<[1], [0], [0], [1], [0, 0, 1, 1], [], []>} : vector<16x16xbf16>, vector<16x8xbf16>, vector<16x8xf32> -> vector<16x8xf32>
    %43 = vector.extract_strided_slice %22 {offsets = [0, 8], sizes = [16, 8], strides = [1, 1]} : vector<16x96xf32> to vector<16x8xf32>
    %44 = vector.extract_strided_slice %22 {offsets = [0, 40], sizes = [16, 8], strides = [1, 1]} : vector<16x96xf32> to vector<16x8xf32>
    %45 = vector.extract_strided_slice %22 {offsets = [0, 72], sizes = [16, 8], strides = [1, 1]} : vector<16x96xf32> to vector<16x8xf32>
    %46 = arith.truncf %43 : vector<16x8xf32> to vector<16x8xbf16>
    %47 = arith.truncf %44 : vector<16x8xf32> to vector<16x8xbf16>
    %cst_21 = arith.constant dense<0.000000e+00> : vector<16x16xf32>
    %48 = tpu.matmul %46, %47, %cst_21 {dimension_numbers = #tpu.dot_dimension_numbers<[1], [1], [0], [0], [0, 0, 1, 0], [], []>} : vector<16x8xbf16>, vector<16x8xbf16>, vector<16x16xf32> -> vector<16x16xf32>
    %49 = arith.addf %48, %0 : vector<16x16xf32>
    %cst_22 = arith.constant dense<0xFF800000> : vector<16xf32>
    %50 = vector.multi_reduction <maximumf>, %49, %cst_22 [1] : vector<16x16xf32> to vector<16xf32>
    %51 = vector.shape_cast %50 : vector<16xf32> to vector<16x1xf32>
    %52 = vector.broadcast %51 : vector<16x1xf32> to vector<16x16xf32>
    %53 = arith.subf %49, %52 : vector<16x16xf32>
    %54 = math.exp %53 : vector<16x16xf32>
    %cst_23 = arith.constant dense<0.000000e+00> : vector<16xf32>
    %55 = vector.multi_reduction <add>, %54, %cst_23 [1] : vector<16x16xf32> to vector<16xf32>
    %56 = vector.shape_cast %55 : vector<16xf32> to vector<16x1xf32>
    %57 = tpu.reciprocal %56 {approx = true} : vector<16x1xf32> -> vector<16x1xf32>
    %58 = vector.broadcast %57 : vector<16x1xf32> to vector<16x16xf32>
    %59 = arith.mulf %54, %58 : vector<16x16xf32>
    %60 = arith.truncf %59 : vector<16x16xf32> to vector<16x16xbf16>
    %61 = arith.truncf %45 : vector<16x8xf32> to vector<16x8xbf16>
    %cst_24 = arith.constant dense<0.000000e+00> : vector<16x8xf32>
    %62 = tpu.matmul %60, %61, %cst_24 {dimension_numbers = #tpu.dot_dimension_numbers<[1], [0], [0], [1], [0, 0, 1, 1], [], []>} : vector<16x16xbf16>, vector<16x8xbf16>, vector<16x8xf32> -> vector<16x8xf32>
    %63 = vector.extract_strided_slice %22 {offsets = [0, 16], sizes = [16, 8], strides = [1, 1]} : vector<16x96xf32> to vector<16x8xf32>
    %64 = vector.extract_strided_slice %22 {offsets = [0, 48], sizes = [16, 8], strides = [1, 1]} : vector<16x96xf32> to vector<16x8xf32>
    %65 = vector.extract_strided_slice %22 {offsets = [0, 80], sizes = [16, 8], strides = [1, 1]} : vector<16x96xf32> to vector<16x8xf32>
    %66 = arith.truncf %63 : vector<16x8xf32> to vector<16x8xbf16>
    %67 = arith.truncf %64 : vector<16x8xf32> to vector<16x8xbf16>
    %cst_25 = arith.constant dense<0.000000e+00> : vector<16x16xf32>
    %68 = tpu.matmul %66, %67, %cst_25 {dimension_numbers = #tpu.dot_dimension_numbers<[1], [1], [0], [0], [0, 0, 1, 0], [], []>} : vector<16x8xbf16>, vector<16x8xbf16>, vector<16x16xf32> -> vector<16x16xf32>
    %69 = arith.addf %68, %0 : vector<16x16xf32>
    %cst_26 = arith.constant dense<0xFF800000> : vector<16xf32>
    %70 = vector.multi_reduction <maximumf>, %69, %cst_26 [1] : vector<16x16xf32> to vector<16xf32>
    %71 = vector.shape_cast %70 : vector<16xf32> to vector<16x1xf32>
    %72 = vector.broadcast %71 : vector<16x1xf32> to vector<16x16xf32>
    %73 = arith.subf %69, %72 : vector<16x16xf32>
    %74 = math.exp %73 : vector<16x16xf32>
    %cst_27 = arith.constant dense<0.000000e+00> : vector<16xf32>
    %75 = vector.multi_reduction <add>, %74, %cst_27 [1] : vector<16x16xf32> to vector<16xf32>
    %76 = vector.shape_cast %75 : vector<16xf32> to vector<16x1xf32>
    %77 = tpu.reciprocal %76 {approx = true} : vector<16x1xf32> -> vector<16x1xf32>
    %78 = vector.broadcast %77 : vector<16x1xf32> to vector<16x16xf32>
    %79 = arith.mulf %74, %78 : vector<16x16xf32>
    %80 = arith.truncf %79 : vector<16x16xf32> to vector<16x16xbf16>
    %81 = arith.truncf %65 : vector<16x8xf32> to vector<16x8xbf16>
    %cst_28 = arith.constant dense<0.000000e+00> : vector<16x8xf32>
    %82 = tpu.matmul %80, %81, %cst_28 {dimension_numbers = #tpu.dot_dimension_numbers<[1], [0], [0], [1], [0, 0, 1, 1], [], []>} : vector<16x16xbf16>, vector<16x8xbf16>, vector<16x8xf32> -> vector<16x8xf32>
    %83 = vector.extract_strided_slice %22 {offsets = [0, 24], sizes = [16, 8], strides = [1, 1]} : vector<16x96xf32> to vector<16x8xf32>
    %84 = vector.extract_strided_slice %22 {offsets = [0, 56], sizes = [16, 8], strides = [1, 1]} : vector<16x96xf32> to vector<16x8xf32>
    %85 = vector.extract_strided_slice %22 {offsets = [0, 88], sizes = [16, 8], strides = [1, 1]} : vector<16x96xf32> to vector<16x8xf32>
    %86 = arith.truncf %83 : vector<16x8xf32> to vector<16x8xbf16>
    %87 = arith.truncf %84 : vector<16x8xf32> to vector<16x8xbf16>
    %cst_29 = arith.constant dense<0.000000e+00> : vector<16x16xf32>
    %88 = tpu.matmul %86, %87, %cst_29 {dimension_numbers = #tpu.dot_dimension_numbers<[1], [1], [0], [0], [0, 0, 1, 0], [], []>} : vector<16x8xbf16>, vector<16x8xbf16>, vector<16x16xf32> -> vector<16x16xf32>
    %89 = arith.addf %88, %0 : vector<16x16xf32>
    %cst_30 = arith.constant dense<0xFF800000> : vector<16xf32>
    %90 = vector.multi_reduction <maximumf>, %89, %cst_30 [1] : vector<16x16xf32> to vector<16xf32>
    %91 = vector.shape_cast %90 : vector<16xf32> to vector<16x1xf32>
    %92 = vector.broadcast %91 : vector<16x1xf32> to vector<16x16xf32>
    %93 = arith.subf %89, %92 : vector<16x16xf32>
    %94 = math.exp %93 : vector<16x16xf32>
    %cst_31 = arith.constant dense<0.000000e+00> : vector<16xf32>
    %95 = vector.multi_reduction <add>, %94, %cst_31 [1] : vector<16x16xf32> to vector<16xf32>
    %96 = vector.shape_cast %95 : vector<16xf32> to vector<16x1xf32>
    %97 = tpu.reciprocal %96 {approx = true} : vector<16x1xf32> -> vector<16x1xf32>
    %98 = vector.broadcast %97 : vector<16x1xf32> to vector<16x16xf32>
    %99 = arith.mulf %94, %98 : vector<16x16xf32>
    %100 = arith.truncf %99 : vector<16x16xf32> to vector<16x16xbf16>
    %101 = arith.truncf %85 : vector<16x8xf32> to vector<16x8xbf16>
    %cst_32 = arith.constant dense<0.000000e+00> : vector<16x8xf32>
    %102 = tpu.matmul %100, %101, %cst_32 {dimension_numbers = #tpu.dot_dimension_numbers<[1], [0], [0], [1], [0, 0, 1, 1], [], []>} : vector<16x16xbf16>, vector<16x8xbf16>, vector<16x8xf32> -> vector<16x8xf32>
    %103 = tpu.concatenate %42, %62, %82, %102 in 1 : vector<16x8xf32>, vector<16x8xf32>, vector<16x8xf32>, vector<16x8xf32> -> vector<16x32xf32>
    %c0_33 = arith.constant 0 : index
    %c0_34 = arith.constant 0 : index
    %c0_35 = arith.constant 0 : index
    %104 = vector.load %arg6[%c0_33, %c0_34, %c0_35] : memref<2x32x32xbf16, #tpu.memory_space<vmem>>, vector<1x32x32xbf16>
    %105 = vector.shape_cast %104 : vector<1x32x32xbf16> to vector<32x32xbf16>
    %106 = arith.truncf %103 : vector<16x32xf32> to vector<16x32xbf16>
    %cst_36 = arith.constant dense<0.000000e+00> : vector<16x32xf32>
    %107 = tpu.matmul %106, %105, %cst_36 {dimension_numbers = #tpu.dot_dimension_numbers<[1], [0], [0], [1], [0, 0, 1, 1], [], []>} : vector<16x32xbf16>, vector<32x32xbf16>, vector<16x32xf32> -> vector<16x32xf32>
    %108 = vector.broadcast %9 : vector<1x32xf32> to vector<16x32xf32>
    %109 = arith.addf %107, %108 : vector<16x32xf32>
    %110 = arith.addf %6, %109 : vector<16x32xf32>
    %cst_37 = arith.constant dense<0.000000e+00> : vector<16xf32>
    %111 = vector.multi_reduction <add>, %110, %cst_37 [1] : vector<16x32xf32> to vector<16xf32>
    %112 = vector.shape_cast %111 : vector<16xf32> to vector<16x1xf32>
    %cst_38 = arith.constant 3.200000e+01 : f32
    %113 = vector.broadcast %cst_38 : f32 to vector<16x1xf32>
    %114 = arith.divf %112, %113 : vector<16x1xf32>
    %115 = vector.broadcast %114 : vector<16x1xf32> to vector<16x32xf32>
    %116 = arith.subf %110, %115 : vector<16x32xf32>
    %117 = arith.mulf %116, %116 : vector<16x32xf32>
    %cst_39 = arith.constant dense<0.000000e+00> : vector<16xf32>
    %118 = vector.multi_reduction <add>, %117, %cst_39 [1] : vector<16x32xf32> to vector<16xf32>
    %119 = vector.shape_cast %118 : vector<16xf32> to vector<16x1xf32>
    %cst_40 = arith.constant 3.200000e+01 : f32
    %120 = vector.broadcast %cst_40 : f32 to vector<16x1xf32>
    %121 = arith.divf %119, %120 : vector<16x1xf32>
    %122 = vector.broadcast %114 : vector<16x1xf32> to vector<16x32xf32>
    %123 = arith.subf %110, %122 : vector<16x32xf32>
    %cst_41 = arith.constant 9.99999974E-6 : f32
    %124 = vector.broadcast %cst_41 : f32 to vector<16x1xf32>
    %125 = arith.addf %121, %124 : vector<16x1xf32>
    %126 = math.rsqrt %125 : vector<16x1xf32>
    %127 = vector.broadcast %126 : vector<16x1xf32> to vector<16x32xf32>
    %128 = arith.mulf %123, %127 : vector<16x32xf32>
    %129 = vector.broadcast %11 : vector<1x32xf32> to vector<16x32xf32>
    %130 = arith.mulf %128, %129 : vector<16x32xf32>
    %131 = vector.broadcast %12 : vector<1x32xf32> to vector<16x32xf32>
    %132 = arith.addf %130, %131 : vector<16x32xf32>
    %c0_42 = arith.constant 0 : index
    %c0_43 = arith.constant 0 : index
    %c0_44 = arith.constant 0 : index
    %133 = vector.load %arg7[%c0_42, %c0_43, %c0_44] : memref<2x32x64xbf16, #tpu.memory_space<vmem>>, vector<1x32x64xbf16>
    %134 = vector.shape_cast %133 : vector<1x32x64xbf16> to vector<32x64xbf16>
    %135 = arith.truncf %132 : vector<16x32xf32> to vector<16x32xbf16>
    %cst_45 = arith.constant dense<0.000000e+00> : vector<16x64xf32>
    %136 = tpu.matmul %135, %134, %cst_45 {dimension_numbers = #tpu.dot_dimension_numbers<[1], [0], [0], [1], [0, 0, 1, 1], [], []>} : vector<16x32xbf16>, vector<32x64xbf16>, vector<16x64xf32> -> vector<16x64xf32>
    %c0_46 = arith.constant 0 : index
    %c0_47 = arith.constant 0 : index
    %c0_48 = arith.constant 0 : index
    %137 = vector.load %arg8[%c0_46, %c0_47, %c0_48] : memref<2x1x64xf32, #tpu.memory_space<vmem>>, vector<1x1x64xf32>
    %138 = vector.shape_cast %137 : vector<1x1x64xf32> to vector<1x64xf32>
    %139 = vector.broadcast %138 : vector<1x64xf32> to vector<16x64xf32>
    %140 = arith.addf %136, %139 : vector<16x64xf32>
    %cst_49 = arith.constant 0.000000e+00 : f32
    %141 = vector.broadcast %cst_49 : f32 to vector<16x64xf32>
    %142 = arith.maximumf %140, %141 : vector<16x64xf32>
    %c0_50 = arith.constant 0 : index
    %c0_51 = arith.constant 0 : index
    %c0_52 = arith.constant 0 : index
    %143 = vector.load %arg9[%c0_50, %c0_51, %c0_52] : memref<2x64x32xbf16, #tpu.memory_space<vmem>>, vector<1x64x32xbf16>
    %144 = vector.shape_cast %143 : vector<1x64x32xbf16> to vector<64x32xbf16>
    %145 = arith.truncf %142 : vector<16x64xf32> to vector<16x64xbf16>
    %cst_53 = arith.constant dense<0.000000e+00> : vector<16x32xf32>
    %146 = tpu.matmul %145, %144, %cst_53 {dimension_numbers = #tpu.dot_dimension_numbers<[1], [0], [0], [1], [0, 0, 1, 1], [], []>} : vector<16x64xbf16>, vector<64x32xbf16>, vector<16x32xf32> -> vector<16x32xf32>
    %147 = vector.broadcast %10 : vector<1x32xf32> to vector<16x32xf32>
    %148 = arith.addf %146, %147 : vector<16x32xf32>
    %149 = arith.addf %132, %148 : vector<16x32xf32>
    %cst_54 = arith.constant dense<0.000000e+00> : vector<16xf32>
    %150 = vector.multi_reduction <add>, %149, %cst_54 [1] : vector<16x32xf32> to vector<16xf32>
    %151 = vector.shape_cast %150 : vector<16xf32> to vector<16x1xf32>
    %cst_55 = arith.constant 3.200000e+01 : f32
    %152 = vector.broadcast %cst_55 : f32 to vector<16x1xf32>
    %153 = arith.divf %151, %152 : vector<16x1xf32>
    %154 = vector.broadcast %153 : vector<16x1xf32> to vector<16x32xf32>
    %155 = arith.subf %149, %154 : vector<16x32xf32>
    %156 = arith.mulf %155, %155 : vector<16x32xf32>
    %cst_56 = arith.constant dense<0.000000e+00> : vector<16xf32>
    %157 = vector.multi_reduction <add>, %156, %cst_56 [1] : vector<16x32xf32> to vector<16xf32>
    %158 = vector.shape_cast %157 : vector<16xf32> to vector<16x1xf32>
    %cst_57 = arith.constant 3.200000e+01 : f32
    %159 = vector.broadcast %cst_57 : f32 to vector<16x1xf32>
    %160 = arith.divf %158, %159 : vector<16x1xf32>
    %161 = vector.broadcast %153 : vector<16x1xf32> to vector<16x32xf32>
    %162 = arith.subf %149, %161 : vector<16x32xf32>
    %cst_58 = arith.constant 9.99999974E-6 : f32
    %163 = vector.broadcast %cst_58 : f32 to vector<16x1xf32>
    %164 = arith.addf %160, %163 : vector<16x1xf32>
    %165 = math.rsqrt %164 : vector<16x1xf32>
    %166 = vector.broadcast %165 : vector<16x1xf32> to vector<16x32xf32>
    %167 = arith.mulf %162, %166 : vector<16x32xf32>
    %168 = vector.broadcast %13 : vector<1x32xf32> to vector<16x32xf32>
    %169 = arith.mulf %167, %168 : vector<16x32xf32>
    %170 = vector.broadcast %14 : vector<1x32xf32> to vector<16x32xf32>
    %171 = arith.addf %169, %170 : vector<16x32xf32>
    %c1 = arith.constant 1 : index
    %c0_59 = arith.constant 0 : index
    %c0_60 = arith.constant 0 : index
    %172 = vector.load %arg10[%c1, %c0_59, %c0_60] : memref<2x6x32xf32, #tpu.memory_space<vmem>>, vector<1x6x32xf32>
    %173 = vector.shape_cast %172 : vector<1x6x32xf32> to vector<6x32xf32>
    %174 = vector.extract_strided_slice %173 {offsets = [0, 0], sizes = [1, 32], strides = [1, 1]} : vector<6x32xf32> to vector<1x32xf32>
    %175 = vector.extract_strided_slice %173 {offsets = [1, 0], sizes = [1, 32], strides = [1, 1]} : vector<6x32xf32> to vector<1x32xf32>
    %176 = vector.extract_strided_slice %173 {offsets = [2, 0], sizes = [1, 32], strides = [1, 1]} : vector<6x32xf32> to vector<1x32xf32>
    %177 = vector.extract_strided_slice %173 {offsets = [3, 0], sizes = [1, 32], strides = [1, 1]} : vector<6x32xf32> to vector<1x32xf32>
    %178 = vector.extract_strided_slice %173 {offsets = [4, 0], sizes = [1, 32], strides = [1, 1]} : vector<6x32xf32> to vector<1x32xf32>
    %179 = vector.extract_strided_slice %173 {offsets = [5, 0], sizes = [1, 32], strides = [1, 1]} : vector<6x32xf32> to vector<1x32xf32>
    %c1_61 = arith.constant 1 : index
    %c0_62 = arith.constant 0 : index
    %c0_63 = arith.constant 0 : index
    %180 = vector.load %arg4[%c1_61, %c0_62, %c0_63] : memref<2x32x96xbf16, #tpu.memory_space<vmem>>, vector<1x32x96xbf16>
    %181 = vector.shape_cast %180 : vector<1x32x96xbf16> to vector<32x96xbf16>
    %182 = arith.truncf %171 : vector<16x32xf32> to vector<16x32xbf16>
    %cst_64 = arith.constant dense<0.000000e+00> : vector<16x96xf32>
    %183 = tpu.matmul %182, %181, %cst_64 {dimension_numbers = #tpu.dot_dimension_numbers<[1], [0], [0], [1], [0, 0, 1, 1], [], []>} : vector<16x32xbf16>, vector<32x96xbf16>, vector<16x96xf32> -> vector<16x96xf32>
    %c1_65 = arith.constant 1 : index
    %c0_66 = arith.constant 0 : index
    %c0_67 = arith.constant 0 : index
    %184 = vector.load %arg5[%c1_65, %c0_66, %c0_67] : memref<2x1x96xf32, #tpu.memory_space<vmem>>, vector<1x1x96xf32>
    %185 = vector.shape_cast %184 : vector<1x1x96xf32> to vector<1x96xf32>
    %186 = vector.broadcast %185 : vector<1x96xf32> to vector<16x96xf32>
    %187 = arith.addf %183, %186 : vector<16x96xf32>
    %188 = vector.extract_strided_slice %187 {offsets = [0, 0], sizes = [16, 8], strides = [1, 1]} : vector<16x96xf32> to vector<16x8xf32>
    %189 = vector.extract_strided_slice %187 {offsets = [0, 32], sizes = [16, 8], strides = [1, 1]} : vector<16x96xf32> to vector<16x8xf32>
    %190 = vector.extract_strided_slice %187 {offsets = [0, 64], sizes = [16, 8], strides = [1, 1]} : vector<16x96xf32> to vector<16x8xf32>
    %191 = arith.truncf %188 : vector<16x8xf32> to vector<16x8xbf16>
    %192 = arith.truncf %189 : vector<16x8xf32> to vector<16x8xbf16>
    %cst_68 = arith.constant dense<0.000000e+00> : vector<16x16xf32>
    %193 = tpu.matmul %191, %192, %cst_68 {dimension_numbers = #tpu.dot_dimension_numbers<[1], [1], [0], [0], [0, 0, 1, 0], [], []>} : vector<16x8xbf16>, vector<16x8xbf16>, vector<16x16xf32> -> vector<16x16xf32>
    %194 = arith.addf %193, %0 : vector<16x16xf32>
    %cst_69 = arith.constant dense<0xFF800000> : vector<16xf32>
    %195 = vector.multi_reduction <maximumf>, %194, %cst_69 [1] : vector<16x16xf32> to vector<16xf32>
    %196 = vector.shape_cast %195 : vector<16xf32> to vector<16x1xf32>
    %197 = vector.broadcast %196 : vector<16x1xf32> to vector<16x16xf32>
    %198 = arith.subf %194, %197 : vector<16x16xf32>
    %199 = math.exp %198 : vector<16x16xf32>
    %cst_70 = arith.constant dense<0.000000e+00> : vector<16xf32>
    %200 = vector.multi_reduction <add>, %199, %cst_70 [1] : vector<16x16xf32> to vector<16xf32>
    %201 = vector.shape_cast %200 : vector<16xf32> to vector<16x1xf32>
    %202 = tpu.reciprocal %201 {approx = true} : vector<16x1xf32> -> vector<16x1xf32>
    %203 = vector.broadcast %202 : vector<16x1xf32> to vector<16x16xf32>
    %204 = arith.mulf %199, %203 : vector<16x16xf32>
    %205 = arith.truncf %204 : vector<16x16xf32> to vector<16x16xbf16>
    %206 = arith.truncf %190 : vector<16x8xf32> to vector<16x8xbf16>
    %cst_71 = arith.constant dense<0.000000e+00> : vector<16x8xf32>
    %207 = tpu.matmul %205, %206, %cst_71 {dimension_numbers = #tpu.dot_dimension_numbers<[1], [0], [0], [1], [0, 0, 1, 1], [], []>} : vector<16x16xbf16>, vector<16x8xbf16>, vector<16x8xf32> -> vector<16x8xf32>
    %208 = vector.extract_strided_slice %187 {offsets = [0, 8], sizes = [16, 8], strides = [1, 1]} : vector<16x96xf32> to vector<16x8xf32>
    %209 = vector.extract_strided_slice %187 {offsets = [0, 40], sizes = [16, 8], strides = [1, 1]} : vector<16x96xf32> to vector<16x8xf32>
    %210 = vector.extract_strided_slice %187 {offsets = [0, 72], sizes = [16, 8], strides = [1, 1]} : vector<16x96xf32> to vector<16x8xf32>
    %211 = arith.truncf %208 : vector<16x8xf32> to vector<16x8xbf16>
    %212 = arith.truncf %209 : vector<16x8xf32> to vector<16x8xbf16>
    %cst_72 = arith.constant dense<0.000000e+00> : vector<16x16xf32>
    %213 = tpu.matmul %211, %212, %cst_72 {dimension_numbers = #tpu.dot_dimension_numbers<[1], [1], [0], [0], [0, 0, 1, 0], [], []>} : vector<16x8xbf16>, vector<16x8xbf16>, vector<16x16xf32> -> vector<16x16xf32>
    %214 = arith.addf %213, %0 : vector<16x16xf32>
    %cst_73 = arith.constant dense<0xFF800000> : vector<16xf32>
    %215 = vector.multi_reduction <maximumf>, %214, %cst_73 [1] : vector<16x16xf32> to vector<16xf32>
    %216 = vector.shape_cast %215 : vector<16xf32> to vector<16x1xf32>
    %217 = vector.broadcast %216 : vector<16x1xf32> to vector<16x16xf32>
    %218 = arith.subf %214, %217 : vector<16x16xf32>
    %219 = math.exp %218 : vector<16x16xf32>
    %cst_74 = arith.constant dense<0.000000e+00> : vector<16xf32>
    %220 = vector.multi_reduction <add>, %219, %cst_74 [1] : vector<16x16xf32> to vector<16xf32>
    %221 = vector.shape_cast %220 : vector<16xf32> to vector<16x1xf32>
    %222 = tpu.reciprocal %221 {approx = true} : vector<16x1xf32> -> vector<16x1xf32>
    %223 = vector.broadcast %222 : vector<16x1xf32> to vector<16x16xf32>
    %224 = arith.mulf %219, %223 : vector<16x16xf32>
    %225 = arith.truncf %224 : vector<16x16xf32> to vector<16x16xbf16>
    %226 = arith.truncf %210 : vector<16x8xf32> to vector<16x8xbf16>
    %cst_75 = arith.constant dense<0.000000e+00> : vector<16x8xf32>
    %227 = tpu.matmul %225, %226, %cst_75 {dimension_numbers = #tpu.dot_dimension_numbers<[1], [0], [0], [1], [0, 0, 1, 1], [], []>} : vector<16x16xbf16>, vector<16x8xbf16>, vector<16x8xf32> -> vector<16x8xf32>
    %228 = vector.extract_strided_slice %187 {offsets = [0, 16], sizes = [16, 8], strides = [1, 1]} : vector<16x96xf32> to vector<16x8xf32>
    %229 = vector.extract_strided_slice %187 {offsets = [0, 48], sizes = [16, 8], strides = [1, 1]} : vector<16x96xf32> to vector<16x8xf32>
    %230 = vector.extract_strided_slice %187 {offsets = [0, 80], sizes = [16, 8], strides = [1, 1]} : vector<16x96xf32> to vector<16x8xf32>
    %231 = arith.truncf %228 : vector<16x8xf32> to vector<16x8xbf16>
    %232 = arith.truncf %229 : vector<16x8xf32> to vector<16x8xbf16>
    %cst_76 = arith.constant dense<0.000000e+00> : vector<16x16xf32>
    %233 = tpu.matmul %231, %232, %cst_76 {dimension_numbers = #tpu.dot_dimension_numbers<[1], [1], [0], [0], [0, 0, 1, 0], [], []>} : vector<16x8xbf16>, vector<16x8xbf16>, vector<16x16xf32> -> vector<16x16xf32>
    %234 = arith.addf %233, %0 : vector<16x16xf32>
    %cst_77 = arith.constant dense<0xFF800000> : vector<16xf32>
    %235 = vector.multi_reduction <maximumf>, %234, %cst_77 [1] : vector<16x16xf32> to vector<16xf32>
    %236 = vector.shape_cast %235 : vector<16xf32> to vector<16x1xf32>
    %237 = vector.broadcast %236 : vector<16x1xf32> to vector<16x16xf32>
    %238 = arith.subf %234, %237 : vector<16x16xf32>
    %239 = math.exp %238 : vector<16x16xf32>
    %cst_78 = arith.constant dense<0.000000e+00> : vector<16xf32>
    %240 = vector.multi_reduction <add>, %239, %cst_78 [1] : vector<16x16xf32> to vector<16xf32>
    %241 = vector.shape_cast %240 : vector<16xf32> to vector<16x1xf32>
    %242 = tpu.reciprocal %241 {approx = true} : vector<16x1xf32> -> vector<16x1xf32>
    %243 = vector.broadcast %242 : vector<16x1xf32> to vector<16x16xf32>
    %244 = arith.mulf %239, %243 : vector<16x16xf32>
    %245 = arith.truncf %244 : vector<16x16xf32> to vector<16x16xbf16>
    %246 = arith.truncf %230 : vector<16x8xf32> to vector<16x8xbf16>
    %cst_79 = arith.constant dense<0.000000e+00> : vector<16x8xf32>
    %247 = tpu.matmul %245, %246, %cst_79 {dimension_numbers = #tpu.dot_dimension_numbers<[1], [0], [0], [1], [0, 0, 1, 1], [], []>} : vector<16x16xbf16>, vector<16x8xbf16>, vector<16x8xf32> -> vector<16x8xf32>
    %248 = vector.extract_strided_slice %187 {offsets = [0, 24], sizes = [16, 8], strides = [1, 1]} : vector<16x96xf32> to vector<16x8xf32>
    %249 = vector.extract_strided_slice %187 {offsets = [0, 56], sizes = [16, 8], strides = [1, 1]} : vector<16x96xf32> to vector<16x8xf32>
    %250 = vector.extract_strided_slice %187 {offsets = [0, 88], sizes = [16, 8], strides = [1, 1]} : vector<16x96xf32> to vector<16x8xf32>
    %251 = arith.truncf %248 : vector<16x8xf32> to vector<16x8xbf16>
    %252 = arith.truncf %249 : vector<16x8xf32> to vector<16x8xbf16>
    %cst_80 = arith.constant dense<0.000000e+00> : vector<16x16xf32>
    %253 = tpu.matmul %251, %252, %cst_80 {dimension_numbers = #tpu.dot_dimension_numbers<[1], [1], [0], [0], [0, 0, 1, 0], [], []>} : vector<16x8xbf16>, vector<16x8xbf16>, vector<16x16xf32> -> vector<16x16xf32>
    %254 = arith.addf %253, %0 : vector<16x16xf32>
    %cst_81 = arith.constant dense<0xFF800000> : vector<16xf32>
    %255 = vector.multi_reduction <maximumf>, %254, %cst_81 [1] : vector<16x16xf32> to vector<16xf32>
    %256 = vector.shape_cast %255 : vector<16xf32> to vector<16x1xf32>
    %257 = vector.broadcast %256 : vector<16x1xf32> to vector<16x16xf32>
    %258 = arith.subf %254, %257 : vector<16x16xf32>
    %259 = math.exp %258 : vector<16x16xf32>
    %cst_82 = arith.constant dense<0.000000e+00> : vector<16xf32>
    %260 = vector.multi_reduction <add>, %259, %cst_82 [1] : vector<16x16xf32> to vector<16xf32>
    %261 = vector.shape_cast %260 : vector<16xf32> to vector<16x1xf32>
    %262 = tpu.reciprocal %261 {approx = true} : vector<16x1xf32> -> vector<16x1xf32>
    %263 = vector.broadcast %262 : vector<16x1xf32> to vector<16x16xf32>
    %264 = arith.mulf %259, %263 : vector<16x16xf32>
    %265 = arith.truncf %264 : vector<16x16xf32> to vector<16x16xbf16>
    %266 = arith.truncf %250 : vector<16x8xf32> to vector<16x8xbf16>
    %cst_83 = arith.constant dense<0.000000e+00> : vector<16x8xf32>
    %267 = tpu.matmul %265, %266, %cst_83 {dimension_numbers = #tpu.dot_dimension_numbers<[1], [0], [0], [1], [0, 0, 1, 1], [], []>} : vector<16x16xbf16>, vector<16x8xbf16>, vector<16x8xf32> -> vector<16x8xf32>
    %268 = tpu.concatenate %207, %227, %247, %267 in 1 : vector<16x8xf32>, vector<16x8xf32>, vector<16x8xf32>, vector<16x8xf32> -> vector<16x32xf32>
    %c1_84 = arith.constant 1 : index
    %c0_85 = arith.constant 0 : index
    %c0_86 = arith.constant 0 : index
    %269 = vector.load %arg6[%c1_84, %c0_85, %c0_86] : memref<2x32x32xbf16, #tpu.memory_space<vmem>>, vector<1x32x32xbf16>
    %270 = vector.shape_cast %269 : vector<1x32x32xbf16> to vector<32x32xbf16>
    %271 = arith.truncf %268 : vector<16x32xf32> to vector<16x32xbf16>
    %cst_87 = arith.constant dense<0.000000e+00> : vector<16x32xf32>
    %272 = tpu.matmul %271, %270, %cst_87 {dimension_numbers = #tpu.dot_dimension_numbers<[1], [0], [0], [1], [0, 0, 1, 1], [], []>} : vector<16x32xbf16>, vector<32x32xbf16>, vector<16x32xf32> -> vector<16x32xf32>
    %273 = vector.broadcast %174 : vector<1x32xf32> to vector<16x32xf32>
    %274 = arith.addf %272, %273 : vector<16x32xf32>
    %275 = arith.addf %171, %274 : vector<16x32xf32>
    %cst_88 = arith.constant dense<0.000000e+00> : vector<16xf32>
    %276 = vector.multi_reduction <add>, %275, %cst_88 [1] : vector<16x32xf32> to vector<16xf32>
    %277 = vector.shape_cast %276 : vector<16xf32> to vector<16x1xf32>
    %cst_89 = arith.constant 3.200000e+01 : f32
    %278 = vector.broadcast %cst_89 : f32 to vector<16x1xf32>
    %279 = arith.divf %277, %278 : vector<16x1xf32>
    %280 = vector.broadcast %279 : vector<16x1xf32> to vector<16x32xf32>
    %281 = arith.subf %275, %280 : vector<16x32xf32>
    %282 = arith.mulf %281, %281 : vector<16x32xf32>
    %cst_90 = arith.constant dense<0.000000e+00> : vector<16xf32>
    %283 = vector.multi_reduction <add>, %282, %cst_90 [1] : vector<16x32xf32> to vector<16xf32>
    %284 = vector.shape_cast %283 : vector<16xf32> to vector<16x1xf32>
    %cst_91 = arith.constant 3.200000e+01 : f32
    %285 = vector.broadcast %cst_91 : f32 to vector<16x1xf32>
    %286 = arith.divf %284, %285 : vector<16x1xf32>
    %287 = vector.broadcast %279 : vector<16x1xf32> to vector<16x32xf32>
    %288 = arith.subf %275, %287 : vector<16x32xf32>
    %cst_92 = arith.constant 9.99999974E-6 : f32
    %289 = vector.broadcast %cst_92 : f32 to vector<16x1xf32>
    %290 = arith.addf %286, %289 : vector<16x1xf32>
    %291 = math.rsqrt %290 : vector<16x1xf32>
    %292 = vector.broadcast %291 : vector<16x1xf32> to vector<16x32xf32>
    %293 = arith.mulf %288, %292 : vector<16x32xf32>
    %294 = vector.broadcast %176 : vector<1x32xf32> to vector<16x32xf32>
    %295 = arith.mulf %293, %294 : vector<16x32xf32>
    %296 = vector.broadcast %177 : vector<1x32xf32> to vector<16x32xf32>
    %297 = arith.addf %295, %296 : vector<16x32xf32>
    %c1_93 = arith.constant 1 : index
    %c0_94 = arith.constant 0 : index
    %c0_95 = arith.constant 0 : index
    %298 = vector.load %arg7[%c1_93, %c0_94, %c0_95] : memref<2x32x64xbf16, #tpu.memory_space<vmem>>, vector<1x32x64xbf16>
    %299 = vector.shape_cast %298 : vector<1x32x64xbf16> to vector<32x64xbf16>
    %300 = arith.truncf %297 : vector<16x32xf32> to vector<16x32xbf16>
    %cst_96 = arith.constant dense<0.000000e+00> : vector<16x64xf32>
    %301 = tpu.matmul %300, %299, %cst_96 {dimension_numbers = #tpu.dot_dimension_numbers<[1], [0], [0], [1], [0, 0, 1, 1], [], []>} : vector<16x32xbf16>, vector<32x64xbf16>, vector<16x64xf32> -> vector<16x64xf32>
    %c1_97 = arith.constant 1 : index
    %c0_98 = arith.constant 0 : index
    %c0_99 = arith.constant 0 : index
    %302 = vector.load %arg8[%c1_97, %c0_98, %c0_99] : memref<2x1x64xf32, #tpu.memory_space<vmem>>, vector<1x1x64xf32>
    %303 = vector.shape_cast %302 : vector<1x1x64xf32> to vector<1x64xf32>
    %304 = vector.broadcast %303 : vector<1x64xf32> to vector<16x64xf32>
    %305 = arith.addf %301, %304 : vector<16x64xf32>
    %cst_100 = arith.constant 0.000000e+00 : f32
    %306 = vector.broadcast %cst_100 : f32 to vector<16x64xf32>
    %307 = arith.maximumf %305, %306 : vector<16x64xf32>
    %c1_101 = arith.constant 1 : index
    %c0_102 = arith.constant 0 : index
    %c0_103 = arith.constant 0 : index
    %308 = vector.load %arg9[%c1_101, %c0_102, %c0_103] : memref<2x64x32xbf16, #tpu.memory_space<vmem>>, vector<1x64x32xbf16>
    %309 = vector.shape_cast %308 : vector<1x64x32xbf16> to vector<64x32xbf16>
    %310 = arith.truncf %307 : vector<16x64xf32> to vector<16x64xbf16>
    %cst_104 = arith.constant dense<0.000000e+00> : vector<16x32xf32>
    %311 = tpu.matmul %310, %309, %cst_104 {dimension_numbers = #tpu.dot_dimension_numbers<[1], [0], [0], [1], [0, 0, 1, 1], [], []>} : vector<16x64xbf16>, vector<64x32xbf16>, vector<16x32xf32> -> vector<16x32xf32>
    %312 = vector.broadcast %175 : vector<1x32xf32> to vector<16x32xf32>
    %313 = arith.addf %311, %312 : vector<16x32xf32>
    %314 = arith.addf %297, %313 : vector<16x32xf32>
    %cst_105 = arith.constant dense<0.000000e+00> : vector<16xf32>
    %315 = vector.multi_reduction <add>, %314, %cst_105 [1] : vector<16x32xf32> to vector<16xf32>
    %316 = vector.shape_cast %315 : vector<16xf32> to vector<16x1xf32>
    %cst_106 = arith.constant 3.200000e+01 : f32
    %317 = vector.broadcast %cst_106 : f32 to vector<16x1xf32>
    %318 = arith.divf %316, %317 : vector<16x1xf32>
    %319 = vector.broadcast %318 : vector<16x1xf32> to vector<16x32xf32>
    %320 = arith.subf %314, %319 : vector<16x32xf32>
    %321 = arith.mulf %320, %320 : vector<16x32xf32>
    %cst_107 = arith.constant dense<0.000000e+00> : vector<16xf32>
    %322 = vector.multi_reduction <add>, %321, %cst_107 [1] : vector<16x32xf32> to vector<16xf32>
    %323 = vector.shape_cast %322 : vector<16xf32> to vector<16x1xf32>
    %cst_108 = arith.constant 3.200000e+01 : f32
    %324 = vector.broadcast %cst_108 : f32 to vector<16x1xf32>
    %325 = arith.divf %323, %324 : vector<16x1xf32>
    %326 = vector.broadcast %318 : vector<16x1xf32> to vector<16x32xf32>
    %327 = arith.subf %314, %326 : vector<16x32xf32>
    %cst_109 = arith.constant 9.99999974E-6 : f32
    %328 = vector.broadcast %cst_109 : f32 to vector<16x1xf32>
    %329 = arith.addf %325, %328 : vector<16x1xf32>
    %330 = math.rsqrt %329 : vector<16x1xf32>
    %331 = vector.broadcast %330 : vector<16x1xf32> to vector<16x32xf32>
    %332 = arith.mulf %327, %331 : vector<16x32xf32>
    %333 = vector.broadcast %178 : vector<1x32xf32> to vector<16x32xf32>
    %334 = arith.mulf %332, %333 : vector<16x32xf32>
    %335 = vector.broadcast %179 : vector<1x32xf32> to vector<16x32xf32>
    %336 = arith.addf %334, %335 : vector<16x32xf32>
    %c0_110 = arith.constant 0 : index
    %c0_111 = arith.constant 0 : index
    %337 = vector.load %arg12[%c0_110, %c0_111] : memref<4x32xf32, #tpu.memory_space<vmem>>, vector<1x32xf32>
    %c1_112 = arith.constant 1 : index
    %c0_113 = arith.constant 0 : index
    %338 = vector.load %arg12[%c1_112, %c0_113] : memref<4x32xf32, #tpu.memory_space<vmem>>, vector<1x32xf32>
    %c2 = arith.constant 2 : index
    %c0_114 = arith.constant 0 : index
    %339 = vector.load %arg12[%c2, %c0_114] : memref<4x32xf32, #tpu.memory_space<vmem>>, vector<1x32xf32>
    %c3 = arith.constant 3 : index
    %c0_115 = arith.constant 0 : index
    %340 = vector.load %arg12[%c3, %c0_115] : memref<4x32xf32, #tpu.memory_space<vmem>>, vector<1x32xf32>
    %c0_116 = arith.constant 0 : index
    %c0_117 = arith.constant 0 : index
    %c0_118 = arith.constant 0 : index
    %341 = vector.load %arg11[%c0_116, %c0_117, %c0_118] : memref<2x32x32xbf16, #tpu.memory_space<vmem>>, vector<1x32x32xbf16>
    %342 = vector.shape_cast %341 : vector<1x32x32xbf16> to vector<32x32xbf16>
    %343 = arith.truncf %336 : vector<16x32xf32> to vector<16x32xbf16>
    %cst_119 = arith.constant dense<0.000000e+00> : vector<16x32xf32>
    %344 = tpu.matmul %343, %342, %cst_119 {dimension_numbers = #tpu.dot_dimension_numbers<[1], [0], [0], [1], [0, 0, 1, 1], [], []>} : vector<16x32xbf16>, vector<32x32xbf16>, vector<16x32xf32> -> vector<16x32xf32>
    %345 = vector.broadcast %337 : vector<1x32xf32> to vector<16x32xf32>
    %346 = arith.addf %344, %345 : vector<16x32xf32>
    %347 = math.tanh %346 : vector<16x32xf32>
    %348 = vector.shape_cast %336 : vector<16x32xf32> to vector<2x8x32xf32>
    %349 = vector.shape_cast %347 : vector<16x32xf32> to vector<2x8x32xf32>
    %350 = vector.shape_cast %338 : vector<1x32xf32> to vector<1x1x32xf32>
    %351 = vector.broadcast %350 : vector<1x1x32xf32> to vector<2x8x32xf32>
    %352 = arith.mulf %349, %351 : vector<2x8x32xf32>
    %cst_120 = arith.constant dense<0.000000e+00> : vector<2x8xf32>
    %353 = vector.multi_reduction <add>, %352, %cst_120 [2] : vector<2x8x32xf32> to vector<2x8xf32>
    %354 = vector.shape_cast %353 : vector<2x8xf32> to vector<2x8x1xf32>
    %cst_121 = arith.constant dense<0xFF800000> : vector<2x1xf32>
    %355 = vector.multi_reduction <maximumf>, %354, %cst_121 [1] : vector<2x8x1xf32> to vector<2x1xf32>
    %356 = vector.shape_cast %355 : vector<2x1xf32> to vector<2x1x1xf32>
    %357 = vector.broadcast %356 : vector<2x1x1xf32> to vector<2x8x1xf32>
    %358 = arith.subf %354, %357 : vector<2x8x1xf32>
    %359 = math.exp %358 : vector<2x8x1xf32>
    %cst_122 = arith.constant dense<0.000000e+00> : vector<2x1xf32>
    %360 = vector.multi_reduction <add>, %359, %cst_122 [1] : vector<2x8x1xf32> to vector<2x1xf32>
    %361 = vector.shape_cast %360 : vector<2x1xf32> to vector<2x1x1xf32>
    %362 = tpu.reciprocal %361 {approx = true} : vector<2x1x1xf32> -> vector<2x1x1xf32>
    %363 = vector.broadcast %362 : vector<2x1x1xf32> to vector<2x8x1xf32>
    %364 = arith.mulf %359, %363 : vector<2x8x1xf32>
    %365 = vector.broadcast %364 : vector<2x8x1xf32> to vector<2x8x32xf32>
    %366 = arith.mulf %365, %348 : vector<2x8x32xf32>
    %cst_123 = arith.constant dense<0.000000e+00> : vector<2x32xf32>
    %367 = vector.multi_reduction <add>, %366, %cst_123 [1] : vector<2x8x32xf32> to vector<2x32xf32>
    %c1_124 = arith.constant 1 : index
    %c0_125 = arith.constant 0 : index
    %c0_126 = arith.constant 0 : index
    %368 = vector.load %arg11[%c1_124, %c0_125, %c0_126] : memref<2x32x32xbf16, #tpu.memory_space<vmem>>, vector<1x32x32xbf16>
    %369 = vector.shape_cast %368 : vector<1x32x32xbf16> to vector<32x32xbf16>
    %370 = arith.truncf %367 : vector<2x32xf32> to vector<2x32xbf16>
    %cst_127 = arith.constant dense<0.000000e+00> : vector<2x32xf32>
    %371 = tpu.matmul %370, %369, %cst_127 {dimension_numbers = #tpu.dot_dimension_numbers<[1], [0], [0], [1], [0, 0, 1, 1], [], []>} : vector<2x32xbf16>, vector<32x32xbf16>, vector<2x32xf32> -> vector<2x32xf32>
    %372 = vector.broadcast %339 : vector<1x32xf32> to vector<2x32xf32>
    %373 = arith.addf %371, %372 : vector<2x32xf32>
    %cst_128 = arith.constant 0.000000e+00 : f32
    %374 = vector.broadcast %cst_128 : f32 to vector<2x32xf32>
    %375 = arith.maximumf %373, %374 : vector<2x32xf32>
    %376 = vector.broadcast %340 : vector<1x32xf32> to vector<2x32xf32>
    %377 = arith.mulf %375, %376 : vector<2x32xf32>
    %cst_129 = arith.constant dense<0.000000e+00> : vector<2xf32>
    %378 = vector.multi_reduction <add>, %377, %cst_129 [1] : vector<2x32xf32> to vector<2xf32>
    %379 = vector.shape_cast %378 : vector<2xf32> to vector<2x1xf32>
    %c0_130 = arith.constant 0 : index
    %380 = memref.load %arg13[%c0_130] : memref<1xf32, #tpu.memory_space<smem>>
    %381 = vector.broadcast %380 : f32 to vector<2x1xf32>
    %382 = arith.addf %379, %381 : vector<2x1xf32>
    %c0_131 = arith.constant 0 : index
    %c0_132 = arith.constant 0 : index
    %383 = vector.load %arg14[%c0_131, %c0_132] : memref<2x1xf32, #tpu.memory_space<vmem>>, vector<2x1xf32>
    tpu.vector_store %arg14[%c0_131, %c0_132], %382 {strides = array<i32>} : memref<2x1xf32, #tpu.memory_space<vmem>>, vector<2x1xf32>,
    return
  }
}

</mosaic_0001>

<bundles_post_ra>
// kernel: tpu_custom_call.1
= control target key start
LH: loop header
LB: loop body
LE: loop exit
PB: predicated region body
PF: predicated region fallthrough
CT: control target
= control target key end

     0   :  { %20 = vsyncpa [#allocation4], 0  ;;  %s3334_s0 = inlined_call_operand.vmem [shape: f32[16,6], index: 0, kind: input, shape index: {}]   ;;  %s3335_s1 = inlined_call_operand.hbm [shape: f32[16,32], index: 1, kind: input, shape index: {}]   ;;  %s3336_s2 = inlined_call_operand.hbm [shape: f32[16,16], index: 2, kind: input, shape index: {}]   ;;  %s3337_s3 = inlined_call_operand.hbm [shape: bf16[6,32], index: 3, kind: input, shape index: {}]   ;;  %s3338_s4 = inlined_call_operand.vmem [shape: bf16[2,32,96], index: 4, kind: input, shape index: {}]   ;;  %s3339_s5 = inlined_call_operand.vmem [shape: f32[2,1,96], index: 5, kind: input, shape index: {}]   ;;  %s3340_s6 = inlined_call_operand.vmem [shape: bf16[2,32,32], index: 6, kind: input, shape index: {}]   ;;  %s3341_s7 = inlined_call_operand.vmem [shape: bf16[2,32,64], index: 7, kind: input, shape index: {}]   ;;  %s3342_s8 = inlined_call_operand.vmem [shape: f32[2,1,64], index: 8, kind: input, shape index: {}]   ;;  %s3343_s9 = inlined_call_operand.vmem [shape: bf16[2,64,32], index: 9, kind: input, shape index: {}]   ;;  %s3344_s10 = inlined_call_operand.vmem [shape: f32[2,6,32], index: 10, kind: input, shape index: {}]   ;;  %s3345_s11 = inlined_call_operand.vmem [shape: bf16[2,32,32], index: 11, kind: input, shape index: {}]   ;;  %s3346_s12 = inlined_call_operand.vmem [shape: f32[4,32], index: 12, kind: input, shape index: {}]   ;;  %s3347_s13 = inlined_call_operand.<no memory space> [shape: f32[1], index: 13, kind: input, shape index: {}]   ;;  %s3348_s14 = inlined_call_operand.vmem [shape: f32[2,1], index: 14, kind: output, shape index: {}]  }
   0x1   :  { %21 = vsyncpa [#allocation6], 0  ;;  %s2723_s29 = smov [#allocation5]   ;;  %s2724_s15 = smov [#allocation3]  }
   0x2   :  { %s41_s30 = sshll.u32 %s2723_s29, 4  ;;  %s29_s16 = sshll.u32 %s2724_s15, 4  ;;  %s42_s30 = int_to_ptr.vmem [resolvable:$true] %s41_s30  ;;  %s2818_s16 = int_to_ptr.vmem [resolvable:$true] %s29_s16 }
   0x3   :  { %s2653_s19 = scalar_lea.hbm %s3336_s2, 256 }
   0x4   :  { %p2654_p0 = scmp.ne.s32.totalorder %s3336_s2, %s2653_s19  ;;  %p2657_p1 = scmp.lt.u32.totalorder %s2653_s19, %s3336_s2 }
   0x6   :  { %p2659_p2 = pnand %p2657_p1, %p2654_p0 }
   0x8   :  { %2662 = shalt.err (!%p2659_p2)
}
   0x9   :  { %s2663_s24 = scalar_lea.vmem %s42_s30, 256  ;;  %p2668_p4 = scmp.lt.s32.totalorder %s42_s30, %s42_s30 }
   0xa   :  { %p2664_p3 = scmp.ne.s32.totalorder %s42_s30, %s2663_s24  ;;  %p2669_p5 = scmp.lt.s32.totalorder %s2663_s24, %s2663_s24 }
   0xc   :  { %p2670_p6 = por %p2669_p5, %p2668_p4 }
   0xe   :  { %p2671_p7 = pnand %p2670_p6, %p2664_p3 }
  0x10   :  { %2674 = shalt.err (!%p2671_p7)
}
  0x11   :  { %s2725_s25 = smov 128   ;;  %s2726_s26 = smov 8  }
  0x12   :  { %47 = dma.hbm_to_vmem [thread:$0]  %s3336_s2, 256, %s42_s30, [#allocation6], %s2725_s25, %s2725_s25, %s2726_s26  }
  0x13   :  { %s2675_s17 = scalar_lea.hbm %s3335_s1, 256 }
  0x14   :  { %p2676_p8 = scmp.ne.s32.totalorder %s3335_s1, %s2675_s17  ;;  %p2679_p9 = scmp.lt.u32.totalorder %s2675_s17, %s3335_s1 }
  0x16   :  { %p2681_p10 = pnand %p2679_p9, %p2676_p8 }
  0x18   :  { %2684 = shalt.err (!%p2681_p10)
}
  0x19   :  { %s2685_s22 = scalar_lea.vmem %s2818_s16, 256  ;;  %p2690_p12 = scmp.lt.s32.totalorder %s2818_s16, %s2818_s16 }
  0x1a   :  { %p2686_p11 = scmp.ne.s32.totalorder %s2818_s16, %s2685_s22  ;;  %p2691_p13 = scmp.lt.s32.totalorder %s2685_s22, %s2685_s22 }
  0x1c   :  { %p2692_p0 = por %p2691_p13, %p2690_p12 }
  0x1e   :  { %p2693_p1 = pnand %p2692_p0, %p2686_p11 }
  0x20   :  { %2696 = shalt.err (!%p2693_p1)
}
  0x21   :  { %35 = dma.hbm_to_vmem [thread:$0]  %s3335_s1, 256, %s2818_s16, [#allocation4], %s2725_s25, %s2725_s25, %s2726_s26  }
  0x22   :  { %s2727_s23 = smov [#allocation7]   ;;  %s2697_s29 = scalar_lea.hbm %s3337_s3, 64 }
  0x23   :  { %s54_s24 = sshll.u32 %s2727_s23, 4  ;;  %p2698_p2 = scmp.ne.s32.totalorder %s3337_s3, %s2697_s29  ;;  %s55_s24 = int_to_ptr.vmem [resolvable:$true] %s54_s24 }
  0x24   :  { %p2701_p3 = scmp.lt.u32.totalorder %s2697_s29, %s3337_s3 }
  0x26   :  { %p2703_p4 = pnand %p2701_p3, %p2698_p2 }
  0x28   :  { %2706 = shalt.err (!%p2703_p4)
}
  0x29   :  { %s2707_s20 = scalar_lea.vmem %s55_s24, 64  ;;  %p2712_p6 = scmp.lt.s32.totalorder %s55_s24, %s55_s24 }
  0x2a   :  { %p2708_p5 = scmp.ne.s32.totalorder %s55_s24, %s2707_s20  ;;  %p2713_p7 = scmp.lt.s32.totalorder %s2707_s20, %s2707_s20 }
  0x2c   :  { %p2714_p8 = por %p2713_p7, %p2712_p6 }
  0x2e   :  { %p2715_p9 = pnand %p2714_p8, %p2708_p5 }
  0x30   :  { %2718 = shalt.err (!%p2715_p9)
}
  0x31   :  { %57 = dma.hbm_to_vmem [thread:$0]  %s3337_s3, 64, %s55_s24, [#allocation6]  }
  0x32   :  { %2719 = dma.done.wait [#allocation4], 256  }
  0x33   :  { %2720 = vsyncadd [#allocation4], 4294967040 }
  0x34   :  { %2721 = dma.done.wait [#allocation6], 320  }
  0x35   :  { %2722 = vsyncadd [#allocation6], 4294966976  ;;  %v2728_v0 = vmov 0.0   ;;  %vm2729_vm0 = vmmov 0   ;;  %vm100_vm1 = vcmask 1042432   ;;  %v90_v2 = vld [vmem:[%s3334_s0] sm:$0xff] }
  0x36   :  { %2297 = vmatprep.subr.bf16.mxu0 %v2728_v0  ;;  %2299 = vmatprep.mubr.msk.bf16.mxu0 %vm2729_vm0, %v2728_v0  ;;  %v92_v1 = vld [vmem:[#allocation7] sm:$0x7]  ;;  %v91_v3 = vld [vmem:[%s3334_s0 + $0x8] sm:$0xff]  ;;  %vm96_vm2 = vcmask 48128   ;;  %vm170_vm3 = vcmask 261120   ;;  %s2730_s28 = smov 120  }
  0x37   :  { %2303 = vmatprep.subr.bf16.mxu1 %v2728_v0  ;;  %2307 = vmatprep.mubr.msk.bf16.mxu1 %vm2729_vm0, %v2728_v0  ;;  %v102_v4 = vsel %vm100_vm1, %v92_v1, 0  ;;  %v93_v5 = vpack.c.bf16 %v91_v3, %v90_v2  ;;  %v2537_v6 = vld [vmem:[%s3338_s4] sm:$0xff]   ;;  %v2538_v7 = vld [vmem:[%s3338_s4 + $0x8] sm:$0xff]   ;;  %s2731_s29 = smov 96   ;;  %s2732_s15 = smov 80   ;;  %vm219_vm4 = vcmask 64512  }
  0x38   :  { %2298 = vmatpush3.bf16.msra.mxu0 %v102_v4  ;;  %2304 = vmatpush3.bf16.msra.mxu1 %v2537_v6  ;;  %v94_v8 = vld [vmem:[#allocation3] sm:$0xff]  ;;  %v95_v10 = vld [vmem:[#allocation3 + $0x8] sm:$0xff]  ;;  %s2733_s17 = smov 88   ;;  %s2734_s18 = smov 72   ;;  %v2935_v36 = vld [vmem:[#allocation5] sm:$0xff]  ;;  %vm267_vm5 = vcmask 130048  }
  0x39   :  { %2311 = vmatprep.subr.bf16.mxu0 %v2728_v0  ;;  %2305 = vmatprep.subr.bf16.mxu1 %v2728_v0  ;;  %v2144_v17 = vld [vmem:[%s3339_s5] ss:$0 sm:$0xff]  ;;  %s2735_s19 = smov 112   ;;  %s2736_s20 = smov 104   ;;  %v2937_v38 = vld [vmem:[#allocation5 + $0x8] sm:$0xff]  ;;  %vm729_vm6 = vcmask 195584  }
  0x3a   :  { %s2737_s1 = smov 56   ;;  %s2738_s16 = smov 64   ;;  %vm945_vm7 = vcmask 523264   ;;  %vm2064_vm8 = vcmask 1041409   ;;  %vm2128_vm9 = vcmask 254976   ;;  %vm2135_vm10 = vcmask 1024  }
  0x3b   :  { %2300 = vmatmul.mubr.msk.bf16.vlgmr.msra.gmra.mrb[0].mxu0 %vm96_vm2, %v93_v5  ;;  %s2739_s25 = smov 48   ;;  %s2740_s3 = smov 40  }
  0x3c   :  { %2313 = vmatprep.mubr.msk.bf16.mxu0 %vm2729_vm0, %v2728_v0  ;;  %2306 = vmatpush3.bf16.msra.mxu1 %v2538_v7  ;;  %s3350_s23 = smov 16   ;;  %s3349_s24 = smov 24  }
  0x3d   :  { %2317 = vmatprep.subr.bf16.mxu1 %v2728_v0 }
 0x10e   :  { %v138_v9 = vpop.f32.mrb[0].mxu0 }
 0x10f   :  { %v2301_v11 = vpop.f32.mrb[1].mxu0  ;;  %v2886_v13 = vadd.f32 %v138_v9, %v94_v8 }
 0x110   :  { %v141_v12 = vpop.f32.mrb[2].mxu0 }
 0x111   :  { %v2888_v14 = vadd.f32 %v141_v12, %v95_v10  ;;  %v2302_v15 = vpop.f32.mrb[3].mxu0 }
 0x113   :  { %v150_v16 = vpack.c.bf16 %v2888_v14, %v2886_v13 }
 0x115   :  { %2308 = vmatmul.mubr.msk.bf16.vlgmr.msra.gmra.mrb[0].mxu1 %vm170_vm3, %v150_v16 }
 0x116   :  { %2319 = vmatprep.mubr.msk.bf16.mxu1 %vm2729_vm0, %v2728_v0 }
 0x1e8   :  { %v208_v18 = vpop.f32.mrb[0].mxu1 }
 0x1e9   :  { %v2309_v19 = vpop.f32.mrb[1].mxu1  ;;  %v209_v21 = vadd.f32 %v2144_v17, %v208_v18 }
 0x1ea   :  { %v211_v20 = vpop.f32.mrb[2].mxu1 }
 0x1eb   :  { %v212_v22 = vadd.f32 %v2144_v17, %v211_v20  ;;  %v2310_v23 = vpop.f32.mrb[3].mxu1 }
 0x1ed   :  { %v2898_v24 = vpack.c.bf16 %v212_v22, %v209_v21 }
 0x1ef   :  { %338 = vrot.lane.b32.xlu1 %v2898_v24, %s2730_s28  ;;  %217 = vrot.lane.b32.xlu0 %v2898_v24, %s2731_s29 }
 0x1f3   :  { %461 = vrot.lane.b32.xlu1 %v2898_v24, %s2732_s15  ;;  %340 = vrot.lane.b32.xlu0 %v2898_v24, %s2733_s17 }
 0x1f7   :  { %582 = vrot.lane.b32.xlu1 %v2898_v24, %s2734_s18  ;;  %459 = vrot.lane.b32.xlu0 %v2898_v24, %s2735_s19 }
 0x1fb   :  { %580 = vrot.lane.b32.xlu0 %v2898_v24, %s2736_s20 }
 0x261   :  { %v218_v25 = vpop.permute.xlu0 %217  ;;  %v339_v28 = vpop.permute.xlu1 %338 }
 0x262   :  { %v224_v26 = vsel %vm219_vm4, %v218_v25, 0 }
 0x263   :  { %2312 = vmatpush3.bf16.xpose.msra.mxu0 %v224_v26 }
 0x264   :  { %2323 = vmatprep.subr.bf16.mxu0 %v2728_v0 }
 0x265   :  { %v341_v27 = vpop.permute.xlu0 %340  ;;  %v462_v30 = vpop.permute.xlu1 %461 }
 0x266   :  { %v346_v29 = vsel %vm219_vm4, %v341_v27, 0  ;;  %v467_v31 = vsel %vm219_vm4, %v462_v30, 0 }
 0x269   :  { %v583_v32 = vpop.permute.xlu1 %582  ;;  %v460_v33 = vpop.permute.xlu0 %459 }
 0x26a   :  { %2314 = vmatmul.mubr.msk.bf16.vlgmr.msra.gmra.mrb[4].mxu0 %vm219_vm4, %v2898_v24  ;;  %v588_v34 = vsel %vm219_vm4, %v583_v32, 0 }
 0x26b   :  { %2324 = vmatpush3.bf16.xpose.msra.mxu0 %v346_v29  ;;  %2325 = vmatprep.mubr.msk.bf16.mxu0 %vm2729_vm0, %v2728_v0 }
 0x26c   :  { %2335 = vmatprep.subr.bf16.mxu0 %v2728_v0 }
 0x26d   :  { %v581_v35 = vpop.permute.xlu0 %580 }
 0x272   :  { %2326 = vmatmul.mubr.msk.bf16.vlgmr.msra.gmra.mrb[8].mxu0 %vm219_vm4, %v339_v28 }
 0x273   :  { %2336 = vmatpush3.bf16.xpose.msra.mxu0 %v467_v31  ;;  %2337 = vmatprep.mubr.msk.bf16.mxu0 %vm2729_vm0, %v2728_v0 }
 0x274   :  { %2347 = vmatprep.subr.bf16.mxu0 %v2728_v0 }
 0x27a   :  { %2338 = vmatmul.mubr.msk.bf16.vlgmr.msra.gmra.mrb[12].mxu0 %vm219_vm4, %v460_v33 }
 0x27b   :  { %2348 = vmatpush3.bf16.xpose.msra.mxu0 %v588_v34  ;;  %2349 = vmatprep.mubr.msk.bf16.mxu0 %vm2729_vm0, %v2728_v0 }
 0x27c   :  { %2359 = vmatprep.subr.bf16.mxu0 %v2728_v0 }
 0x282   :  { %2350 = vmatmul.mubr.msk.bf16.vlgmr.msra.gmra.mrb[16].mxu0 %vm219_vm4, %v581_v35 }
 0x283   :  { %2363 = vmatprep.mubr.msk.bf16.mxu0 %vm2729_vm0, %v2728_v0 }
 0x33d   :  { %v260_v37 = vpop.f32.mrb[4].mxu0 }
 0x33e   :  { %v261_v39 = vadd.f32 %v260_v37, %v2935_v36  ;;  %v2315_v40 = vpop.f32.mrb[5].mxu0 }
 0x33f   :  { %v263_v41 = vpop.f32.mrb[6].mxu0 }
 0x340   :  { %v264_v42 = vadd.f32 %v263_v41, %v2937_v38  ;;  %v2316_v43 = vpop.f32.mrb[7].mxu0  ;;  %v268_v44 = vsel %vm267_vm5, %v261_v39, -inf }
 0x341   :  { %269 = vmax.xlane.f32.xlu1 %v268_v44 }
 0x342   :  { %v271_v45 = vsel %vm267_vm5, %v264_v42, -inf }
 0x343   :  { %272 = vmax.xlane.f32.xlu0 %v271_v45 }
 0x345   :  { %v382_v46 = vpop.f32.mrb[8].mxu0 }
 0x346   :  { %v383_v47 = vadd.f32 %v382_v46, %v2935_v36  ;;  %v2327_v48 = vpop.f32.mrb[9].mxu0 }
 0x347   :  { %v385_v49 = vpop.f32.mrb[10].mxu0 }
 0x348   :  { %v386_v50 = vadd.f32 %v385_v49, %v2937_v38  ;;  %v2328_v51 = vpop.f32.mrb[11].mxu0  ;;  %v389_v52 = vsel %vm267_vm5, %v383_v47, -inf }
 0x349   :  { %390 = vmax.xlane.f32.xlu0 %v389_v52 }
 0x34a   :  { %v392_v53 = vsel %vm267_vm5, %v386_v50, -inf }
 0x34b   :  { %393 = vmax.xlane.f32.xlu1 %v392_v53 }
 0x34d   :  { %v503_v54 = vpop.f32.mrb[12].mxu0 }
 0x34e   :  { %v504_v55 = vadd.f32 %v503_v54, %v2935_v36  ;;  %v2339_v56 = vpop.f32.mrb[13].mxu0 }
 0x34f   :  { %v506_v57 = vpop.f32.mrb[14].mxu0 }
 0x350   :  { %v507_v58 = vadd.f32 %v506_v57, %v2937_v38  ;;  %v2340_v59 = vpop.f32.mrb[15].mxu0  ;;  %v510_v60 = vsel %vm267_vm5, %v504_v55, -inf }
 0x351   :  { %511 = vmax.xlane.f32.xlu0 %v510_v60 }
 0x352   :  { %v513_v61 = vsel %vm267_vm5, %v507_v58, -inf }
 0x353   :  { %514 = vmax.xlane.f32.xlu1 %v513_v61 }
 0x355   :  { %v624_v62 = vpop.f32.mrb[16].mxu0 }
 0x356   :  { %v625_v63 = vadd.f32 %v624_v62, %v2935_v36  ;;  %v2351_v1 = vpop.f32.mrb[17].mxu0 }
 0x357   :  { %v627_v2 = vpop.f32.mrb[18].mxu0 }
 0x358   :  { %v628_v3 = vadd.f32 %v627_v2, %v2937_v38  ;;  %v2352_v4 = vpop.f32.mrb[19].mxu0  ;;  %v631_v5 = vsel %vm267_vm5, %v625_v63, -inf }
 0x359   :  { %632 = vmax.xlane.f32.xlu0 %v631_v5 }
 0x35a   :  { %v634_v6 = vsel %vm267_vm5, %v628_v3, -inf }
 0x35b   :  { %635 = vmax.xlane.f32.xlu1 %v634_v6 }
 0x3ce   :  { %v270_v7 = vpop.xlane.xlu1 %269 }
 0x3cf   :  { %v274_v8 = vsub.f32 %v261_v39, %v270_v7 }
 0x3d0   :  { %v273_v9 = vpop.xlane.xlu0 %272 }
 0x3d1   :  { %v276_v10 = vmul.f32 1.442695, %v274_v8  ;;  %v275_v11 = vsub.f32 %v264_v42, %v273_v9 }
 0x3d3   :  { %2561 = vpow2.f32 %v276_v10  ;;  %v278_v12 = vmul.f32 1.442695, %v275_v11 }
 0x3d5   :  { %2563 = vpow2.f32 %v278_v12 }
 0x3d6   :  { %v391_v15 = vpop.xlane.xlu0 %390 }
 0x3d7   :  { %v395_v16 = vsub.f32 %v383_v47, %v391_v15 }
 0x3d8   :  { %v394_v25 = vpop.xlane.xlu1 %393 }
 0x3d9   :  { %v397_v17 = vmul.f32 1.442695, %v395_v16  ;;  %v396_v26 = vsub.f32 %v386_v50, %v394_v25 }
 0x3db   :  { %2565 = vpow2.f32 %v397_v17  ;;  %v399_v29 = vmul.f32 1.442695, %v396_v26 }
 0x3dd   :  { %v2562_v18 = vpop.eup %2561  ;;  %2567 = vpow2.f32 %v399_v29 }
 0x3de   :  { %v280_v19 = vsel %vm267_vm5, %v2562_v18, 0.0  ;;  %v512_v28 = vpop.xlane.xlu0 %511 }
 0x3df   :  { %v2564_v20 = vpop.eup %2563  ;;  %281 = vadd.xlane.f32.xlu0 %v280_v19  ;;  %v516_v32 = vsub.f32 %v504_v55, %v512_v28 }
 0x3e0   :  { %v283_v21 = vsel %vm267_vm5, %v2564_v20, 0.0  ;;  %v515_v27 = vpop.xlane.xlu1 %514 }
 0x3e1   :  { %284 = vadd.xlane.f32.xlu1 %v283_v21  ;;  %v517_v30 = vsub.f32 %v507_v58, %v515_v27  ;;  %v518_v37 = vmul.f32 1.442695, %v516_v32 }
 0x3e3   :  { %v520_v34 = vmul.f32 1.442695, %v517_v30  ;;  %v2539_v30 = vld [vmem:[%s3340_s6] sm:$0xff]  }
 0x3e4   :  { %2360 = vmatpush3.bf16.msra.mxu0 %v2539_v30 }
 0x3e5   :  { %v2957_v22 = vpop.eup %2565  ;;  %2569 = vpow2.f32 %v520_v34  ;;  %2361 = vmatprep.subr.bf16.mxu0 %v2728_v0 }
 0x3e6   :  { %v401_v23 = vsel %vm267_vm5, %v2957_v22, 0.0  ;;  %v633_v33 = vpop.xlane.xlu0 %632  ;;  %2571 = vpow2.f32 %v518_v37 }
 0x3e7   :  { %402 = vadd.xlane.f32.xlu0 %v401_v23  ;;  %v637_v39 = vsub.f32 %v625_v63, %v633_v33  ;;  %v2568_v42 = vpop.eup %2567 }
 0x3e8   :  { %v636_v31 = vpop.xlane.xlu1 %635  ;;  %v404_v43 = vsel %vm267_vm5, %v2568_v42, 0.0 }
 0x3e9   :  { %v638_v35 = vsub.f32 %v628_v3, %v636_v31  ;;  %v639_v41 = vmul.f32 1.442695, %v637_v39 }
 0x3eb   :  { %v641_v40 = vmul.f32 1.442695, %v638_v35  ;;  %v2540_v35 = vld [vmem:[%s3340_s6 + $0x8] sm:$0xff]  }
 0x3ec   :  { %2362 = vmatpush3.bf16.msra.mxu0 %v2540_v35 }
 0x3ed   :  { %2573 = vpow2.f32 %v641_v40  ;;  %2375 = vmatprep.subr.bf16.mxu0 %v2728_v0 }
 0x3ee   :  { %2575 = vpow2.f32 %v639_v41 }
 0x3ef   :  { %v2570_v44 = vpop.eup %2569 }
 0x3f0   :  { %v2572_v45 = vpop.eup %2571  ;;  %v525_v46 = vsel %vm267_vm5, %v2570_v44, 0.0 }
 0x3f1   :  { %v522_v48 = vsel %vm267_vm5, %v2572_v45, 0.0 }
 0x3f2   :  { %412 = vrot.lane.b32.xlu1 %v2898_v24, %s2737_s1 }
 0x3f7   :  { %v2967_v47 = vpop.eup %2573 }
 0x3f8   :  { %v2576_v49 = vpop.eup %2575  ;;  %v646_v50 = vsel %vm267_vm5, %v2967_v47, 0.0 }
 0x3f9   :  { %v643_v51 = vsel %vm267_vm5, %v2576_v49, 0.0 }
 0x3fd   :  { %291 = vrot.lane.b32.xlu0 %v2898_v24, %s2738_s16 }
 0x416   :  { %405 = vadd.xlane.f32.xlu1 %v404_v43 }
 0x41a   :  { %526 = vadd.xlane.f32.xlu1 %v525_v46 }
 0x41c   :  { %523 = vadd.xlane.f32.xlu0 %v522_v48 }
 0x41e   :  { %647 = vadd.xlane.f32.xlu1 %v646_v50 }
 0x420   :  { %644 = vadd.xlane.f32.xlu0 %v643_v51 }
 0x42f   :  { %533 = vrot.lane.b32.xlu1 %v2898_v24, %s2739_s25 }
 0x436   :  { %654 = vrot.lane.b32.xlu0 %v2898_v24, %s2740_s3 }
 0x46c   :  { %v282_v52 = vpop.xlane.xlu0 %281 }
 0x46d   :  { %2577 = vrcp.f32 %v282_v52 }
 0x46e   :  { %v285_v53 = vpop.xlane.xlu1 %284 }
 0x46f   :  { %2579 = vrcp.f32 %v285_v53 }
 0x472   :  { %v413_v61 = vpop.permute.xlu1 %412 }
 0x474   :  { %v403_v54 = vpop.xlane.xlu0 %402 }
 0x475   :  { %2581 = vrcp.f32 %v403_v54 }
 0x477   :  { %v2578_v55 = vpop.eup %2577 }
 0x478   :  { %v292_v56 = vpop.permute.xlu0 %291  ;;  %v288_v58 = vmul.f32 %v2578_v55, %v2562_v18 }
 0x479   :  { %v2580_v57 = vpop.eup %2579  ;;  %2318 = vmatpush3.bf16.msra.mxu1 %v292_v56 }
 0x47a   :  { %v289_v59 = vmul.f32 %v2580_v57, %v2564_v20  ;;  %2329 = vmatprep.subr.bf16.mxu1 %v2728_v0 }
 0x47c   :  { %v290_v60 = vpack.c.bf16 %v289_v59, %v288_v58 }
 0x47e   :  { %2320 = vmatmul.mubr.msk.bf16.vlgmr.msra.gmra.mrb[4].mxu1 %vm267_vm5, %v290_v60 }
 0x47f   :  { %2330 = vmatpush3.bf16.msra.mxu1 %v413_v61  ;;  %2331 = vmatprep.mubr.msk.bf16.mxu1 %vm2729_vm0, %v2728_v0  ;;  %v2582_v1 = vpop.eup %2581 }
 0x480   :  { %2341 = vmatprep.subr.bf16.mxu1 %v2728_v0  ;;  %v409_v5 = vmul.f32 %v2582_v1, %v2957_v22  ;;  %v3021_v1 = vld [vmem:[%s3344_s10] sm:$0x3f] }
 0x4a3   :  { %v406_v24 = vpop.xlane.xlu1 %405 }
 0x4a4   :  { %2583 = vrcp.f32 %v406_v24  ;;  %v737_v24 = vlaneseq }
 0x4a7   :  { %v527_v62 = vpop.xlane.xlu1 %526 }
 0x4a8   :  { %2585 = vrcp.f32 %v527_v62  ;;  %v3015_v62 = vshrl.u32 %v737_v24, 7 }
 0x4a9   :  { %v524_v63 = vpop.xlane.xlu0 %523 }
 0x4aa   :  { %2587 = vrcp.f32 %v524_v63  ;;  %v739_v63 = vsub.s32 0, %v3015_v62 }
 0x4ab   :  { %v648_v2 = vpop.xlane.xlu1 %647 }
 0x4ad   :  { %v645_v3 = vpop.xlane.xlu0 %644 }
 0x4ae   :  { %v2584_v4 = vpop.eup %2583  ;;  %2589 = vrcp.f32 %v645_v3 }
 0x4af   :  { %v410_v6 = vmul.f32 %v2584_v4, %v2568_v42  ;;  %2591 = vrcp.f32 %v648_v2  ;;  %v534_v9 = vpop.permute.xlu1 %533  ;;  %v740_v2 = vrot.slane %v3021_v1, %v739_v63 }
 0x4b1   :  { %v411_v7 = vpack.c.bf16 %v410_v6, %v409_v5  ;;  %v655_v17 = vpop.permute.xlu0 %654 }
 0x4b2   :  { %v2586_v8 = vpop.eup %2585 }
 0x4b3   :  { %2332 = vmatmul.mubr.msk.bf16.vlgmr.msra.gmra.mrb[8].mxu1 %vm267_vm5, %v411_v7  ;;  %v531_v12 = vmul.f32 %v2586_v8, %v2570_v44 }
 0x4b4   :  { %v2588_v10 = vpop.eup %2587  ;;  %2342 = vmatpush3.bf16.msra.mxu1 %v534_v9  ;;  %2343 = vmatprep.mubr.msk.bf16.mxu1 %vm2729_vm0, %v2728_v0 }
 0x4b5   :  { %v530_v11 = vmul.f32 %v2588_v10, %v2572_v45  ;;  %2353 = vmatprep.subr.bf16.mxu1 %v2728_v0 }
 0x4b7   :  { %v532_v15 = vpack.c.bf16 %v531_v12, %v530_v11 }
 0x4b8   :  { %v2590_v16 = vpop.eup %2589 }
 0x4b9   :  { %v2592_v18 = vpop.eup %2591  ;;  %v651_v19 = vmul.f32 %v2590_v16, %v2576_v49 }
 0x4ba   :  { %v652_v20 = vmul.f32 %v2592_v18, %v2967_v47 }
 0x4bb   :  { %2344 = vmatmul.mubr.msk.bf16.vlgmr.msra.gmra.mrb[12].mxu1 %vm267_vm5, %v532_v15 }
 0x4bc   :  { %2354 = vmatpush3.bf16.msra.mxu1 %v655_v17  ;;  %2355 = vmatprep.mubr.msk.bf16.mxu1 %vm2729_vm0, %v2728_v0  ;;  %v653_v21 = vpack.c.bf16 %v652_v20, %v651_v19 }
 0x4bd   :  { %2367 = vmatprep.subr.bf16.mxu1 %v2728_v0 }
 0x4c3   :  { %2356 = vmatmul.mubr.msk.bf16.vlgmr.msra.gmra.mrb[16].mxu1 %vm267_vm5, %v653_v21 }
 0x4c4   :  { %2371 = vmatprep.mubr.msk.bf16.mxu1 %vm2729_vm0, %v2728_v0 }
 0x551   :  { %v331_v22 = vpop.f32.mrb[4].mxu1 }
 0x552   :  { %v2321_v23 = vpop.f32.mrb[5].mxu1 }
 0x553   :  { %v334_v25 = vpop.f32.mrb[6].mxu1 }
 0x554   :  { %v2322_v26 = vpop.f32.mrb[7].mxu1 }
 0x555   :  { %v2543_v26 = vld [vmem:[%s3343_s9] sm:$0xff]  }
 0x586   :  { %v452_v27 = vpop.f32.mrb[8].mxu1 }
 0x587   :  { %v2333_v28 = vpop.f32.mrb[9].mxu1 }
 0x588   :  { %v455_v29 = vpop.f32.mrb[10].mxu1 }
 0x589   :  { %v2507_v31 = vpack.i.bf16 %v455_v29, %v452_v27  ;;  %v2334_v32 = vpop.f32.mrb[11].mxu1  ;;  %v2544_v27 = vld [vmem:[%s3343_s9 + $0x8] sm:$0xff]  }
 0x58b   :  { %2508 = vrot.lane.b32.xlu1 %v2507_v31, %s2726_s26 }
 0x58e   :  { %v573_v33 = vpop.f32.mrb[12].mxu1 }
 0x58f   :  { %v2345_v34 = vpop.f32.mrb[13].mxu1 }
 0x590   :  { %v576_v37 = vpop.f32.mrb[14].mxu1  ;;  %v828_v34 = vsub.s32 2, %v3015_v62 }
 0x591   :  { %v2512_v39 = vpack.i.bf16 %v576_v37, %v573_v33  ;;  %v2346_v40 = vpop.f32.mrb[15].mxu1 }
 0x592   :  { %v829_v37 = vrot.slane %v3021_v1, %v828_v34  ;;  %v834_v40 = vsub.s32 3, %v3015_v62 }
 0x593   :  { %2513 = vrot.lane.b32.xlu0 %v2512_v39, %s3350_s23 }
 0x596   :  { %v694_v41 = vpop.f32.mrb[16].mxu1 }
 0x597   :  { %v2357_v42 = vpop.f32.mrb[17].mxu1 }
 0x598   :  { %v697_v43 = vpop.f32.mrb[18].mxu1 }
 0x599   :  { %v2517_v44 = vpack.i.bf16 %v697_v43, %v694_v41  ;;  %v2358_v45 = vpop.f32.mrb[19].mxu1 }
 0x59b   :  { %2518 = vrot.lane.b32.xlu1 %v2517_v44, %s3349_s24  ;;  %v835_v44 = vrot.slane %v3021_v1, %v834_v40 }
 0x5fd   :  { %v2509_v46 = vpop.permute.xlu1 %2508 }
 0x5fe   :  { %v2511_v48 = vunpack.i.h.bf16 %v2509_v46  ;;  %v2510_v49 = vunpack.i.l.bf16 %v2509_v46 }
 0x600   :  { %v726_v53 = vsel %vm219_vm4, %v334_v25, %v2511_v48  ;;  %v725_v54 = vsel %vm219_vm4, %v331_v22, %v2510_v49  ;;  %v2542_v25 = vld [vmem:[%s3341_s7 + $0x8] sm:$0xff]   ;;  %v2545_v49 = vld [vmem:[%s3343_s9 + $0x10] sm:$0xff]  }
 0x605   :  { %v2514_v47 = vpop.permute.xlu0 %2513 }
 0x606   :  { %v2516_v50 = vunpack.i.h.bf16 %v2514_v47  ;;  %v2515_v51 = vunpack.i.l.bf16 %v2514_v47 }
 0x608   :  { %v727_v57 = vsel %vm267_vm5, %v725_v54, %v2515_v51  ;;  %v728_v58 = vsel %vm267_vm5, %v726_v53, %v2516_v50  ;;  %v2546_v50 = vld [vmem:[%s3343_s9 + $0x18] sm:$0xff]   ;;  %v2159_v51 = vld [vmem:[%s3342_s8] ss:$0 sm:$0xff] }
 0x60d   :  { %v2519_v52 = vpop.permute.xlu1 %2518 }
 0x60e   :  { %v2521_v55 = vunpack.i.h.bf16 %v2519_v52  ;;  %v2520_v56 = vunpack.i.l.bf16 %v2519_v52 }
 0x610   :  { %v730_v59 = vsel %vm729_vm6, %v727_v57, %v2520_v56  ;;  %v731_v60 = vsel %vm729_vm6, %v728_v58, %v2521_v55 }
 0x611   :  { %v736_v61 = vpack.c.bf16 %v731_v60, %v730_v59 }
 0x613   :  { %2364 = vmatmul.mubr.msk.bf16.vlgmr.msra.gmra.mrb[20].mxu0 %vm170_vm3, %v736_v61  ;;  %v919_v61 = vsub.s32 1, %v3015_v62 }
 0x614   :  { %2383 = vmatprep.mubr.msk.bf16.mxu0 %vm2729_vm0, %v2728_v0  ;;  %2376 = vmatpush3.bf16.msra.mxu0 %v2543_v26 }
 0x615   :  { %2377 = vmatprep.subr.bf16.mxu0 %v2728_v0  ;;  %v920_v24 = vrot.slane %v3021_v1, %v919_v61 }
 0x618   :  { %2378 = vmatpush3.bf16.msra.mxu0 %v2544_v27 }
 0x619   :  { %2379 = vmatprep.subr.bf16.mxu0 %v2728_v0 }
 0x61c   :  { %2380 = vmatpush3.bf16.msra.mxu0 %v2545_v49 }
 0x61d   :  { %2381 = vmatprep.subr.bf16.mxu0 %v2728_v0 }
 0x620   :  { %2382 = vmatpush3.bf16.msra.mxu0 %v2546_v50 }
 0x621   :  { %2401 = vmatprep.subr.bf16.mxu0 %v2728_v0 }
 0x6e6   :  { %v790_v3 = vpop.f32.mrb[20].mxu0 }
 0x6e7   :  { %v791_v4 = vadd.f32 %v790_v3, %v740_v2  ;;  %v2365_v5 = vpop.f32.mrb[21].mxu0 }
 0x6e8   :  { %v793_v6 = vpop.f32.mrb[22].mxu0 }
 0x6e9   :  { %v794_v7 = vadd.f32 %v793_v6, %v740_v2  ;;  %v2366_v8 = vpop.f32.mrb[23].mxu0  ;;  %v797_v9 = vadd.f32 %v791_v4, %v2886_v13 }
 0x6eb   :  { %v799_v10 = vsel %vm170_vm3, %v797_v9, 0.0  ;;  %v798_v11 = vadd.f32 %v794_v7, %v2888_v14  ;;  %v2541_v14 = vld [vmem:[%s3341_s7] sm:$0xff]  }
 0x6ec   :  { %800 = vadd.xlane.f32.xlu0 %v799_v10  ;;  %2368 = vmatpush3.bf16.msra.mxu1 %v2541_v14  ;;  %v2548_v14 = vld [vmem:[%s3338_s4 + $0x18] sm:$0xff]  }
 0x6ed   :  { %v802_v12 = vsel %vm170_vm3, %v798_v11, 0.0  ;;  %2369 = vmatprep.subr.bf16.mxu1 %v2728_v0 }
 0x6ee   :  { %803 = vadd.xlane.f32.xlu1 %v802_v12 }
 0x6f0   :  { %2370 = vmatpush3.bf16.msra.mxu1 %v2542_v25 }
 0x6f1   :  { %2387 = vmatprep.subr.bf16.mxu1 %v2728_v0 }
 0x779   :  { %v801_v15 = vpop.xlane.xlu0 %800 }
 0x77a   :  { %v806_v16 = vmul.f32 0.03125, %v801_v15 }
 0x77b   :  { %v804_v17 = vpop.xlane.xlu1 %803 }
 0x77c   :  { %v808_v18 = vsub.f32 %v797_v9, %v806_v16  ;;  %v807_v19 = vmul.f32 0.03125, %v804_v17 }
 0x77e   :  { %v809_v20 = vsub.f32 %v798_v11, %v807_v19  ;;  %v810_v21 = vmul.f32 %v808_v18, %v808_v18 }
 0x780   :  { %v812_v22 = vsel %vm170_vm3, %v810_v21, 0.0  ;;  %v811_v23 = vmul.f32 %v809_v20, %v809_v20 }
 0x781   :  { %813 = vadd.xlane.f32.xlu0 %v812_v22 }
 0x782   :  { %v815_v13 = vsel %vm170_vm3, %v811_v23, 0.0 }
 0x785   :  { %816 = vadd.xlane.f32.xlu0 %v815_v13  ;;  %v2547_v13 = vld [vmem:[%s3338_s4 + $0x10] sm:$0xff]  }
 0x80e   :  { %v814_v28 = vpop.xlane.xlu0 %813 }
 0x80f   :  { %v818_v29 = vmul.f32 0.03125, %v814_v28 }
 0x811   :  { %v820_v30 = vadd.f32 1e-05, %v818_v29 }
 0x812   :  { %v817_v31 = vpop.xlane.xlu0 %816 }
 0x813   :  { %2593 = vrsqrt.f32 %v820_v30  ;;  %v819_v32 = vmul.f32 0.03125, %v817_v31  ;;  %v1020_v31 = vsub.s32 4, %v3015_v62 }
 0x815   :  { %v821_v33 = vadd.f32 1e-05, %v819_v32  ;;  %v1021_v32 = vrot.slane %v3021_v1, %v1020_v31 }
 0x817   :  { %2595 = vrsqrt.f32 %v821_v33  ;;  %v1026_v33 = vsub.s32 5, %v3015_v62 }
 0x81d   :  { %v2594_v35 = vpop.eup %2593 }
 0x81e   :  { %v824_v39 = vmul.f32 %v2594_v35, %v808_v18 }
 0x820   :  { %v830_v42 = vmul.f32 %v829_v37, %v824_v39 }
 0x821   :  { %v2596_v41 = vpop.eup %2595 }
 0x822   :  { %v825_v43 = vmul.f32 %v2596_v41, %v809_v20  ;;  %v836_v46 = vadd.f32 %v835_v44, %v830_v42 }
 0x824   :  { %v831_v45 = vmul.f32 %v829_v37, %v825_v43  ;;  %v1027_v43 = vrot.slane %v3021_v1, %v1026_v33 }
 0x826   :  { %v837_v47 = vadd.f32 %v835_v44, %v831_v45 }
 0x828   :  { %v842_v48 = vpack.c.bf16 %v837_v47, %v836_v46 }
 0x82a   :  { %2372 = vmatmul.mubr.msk.bf16.vlgmr.msra.gmra.mrb[20].mxu1 %vm170_vm3, %v842_v48  ;;  %v2174_v48 = vld [vmem:[%s3339_s5 + $0x1] ss:$0 sm:$0xff] }
 0x82b   :  { %2391 = vmatprep.mubr.msk.bf16.mxu1 %vm2729_vm0, %v2728_v0  ;;  %2388 = vmatpush3.bf16.msra.mxu1 %v2547_v13 }
 0x82c   :  { %2389 = vmatprep.subr.bf16.mxu1 %v2728_v0 }
 0x82f   :  { %2390 = vmatpush3.bf16.msra.mxu1 %v2548_v14 }
 0x830   :  { %2395 = vmatprep.subr.bf16.mxu1 %v2728_v0 }
 0x8fd   :  { %v899_v52 = vpop.f32.mrb[20].mxu1 }
 0x8fe   :  { %v900_v53 = vadd.f32 %v2159_v51, %v899_v52  ;;  %v2373_v54 = vpop.f32.mrb[21].mxu1 }
 0x8ff   :  { %v902_v55 = vpop.f32.mrb[22].mxu1 }
 0x900   :  { %v903_v56 = vadd.f32 %v2159_v51, %v902_v55  ;;  %v2374_v57 = vpop.f32.mrb[23].mxu1  ;;  %v906_v58 = vmax.f32 %v900_v53, 0.0 }
 0x902   :  { %v907_v59 = vmax.f32 %v903_v56, 0.0 }
 0x904   :  { %v916_v60 = vpack.c.bf16 %v907_v59, %v906_v58 }
 0x906   :  { %2384 = vmatmul.mubr.msk.bf16.vlgmr.msra.gmra.mrb[24].mxu0 %vm945_vm7, %v916_v60 }
 0x907   :  { %2403 = vmatprep.mubr.msk.bf16.mxu0 %vm2729_vm0, %v2728_v0 }
 0x9d9   :  { %v983_v2 = vpop.f32.mrb[24].mxu0 }
 0x9da   :  { %v984_v3 = vadd.f32 %v983_v2, %v920_v24  ;;  %v2385_v4 = vpop.f32.mrb[25].mxu0 }
 0x9db   :  { %v986_v5 = vpop.f32.mrb[26].mxu0 }
 0x9dc   :  { %v987_v6 = vadd.f32 %v986_v5, %v920_v24  ;;  %v2386_v7 = vpop.f32.mrb[27].mxu0  ;;  %v990_v8 = vadd.f32 %v984_v3, %v836_v46 }
 0x9de   :  { %v992_v9 = vsel %vm170_vm3, %v990_v8, 0.0  ;;  %v991_v10 = vadd.f32 %v987_v6, %v837_v47 }
 0x9df   :  { %993 = vadd.xlane.f32.xlu1 %v992_v9 }
 0x9e0   :  { %v995_v11 = vsel %vm170_vm3, %v991_v10, 0.0 }
 0x9e1   :  { %996 = vadd.xlane.f32.xlu0 %v995_v11 }
 0xa6c   :  { %v994_v12 = vpop.xlane.xlu1 %993 }
 0xa6d   :  { %v998_v15 = vmul.f32 0.03125, %v994_v12 }
 0xa6e   :  { %v997_v16 = vpop.xlane.xlu0 %996 }
 0xa6f   :  { %v1000_v17 = vsub.f32 %v990_v8, %v998_v15  ;;  %v999_v18 = vmul.f32 0.03125, %v997_v16 }
 0xa71   :  { %v1001_v19 = vsub.f32 %v991_v10, %v999_v18  ;;  %v1002_v20 = vmul.f32 %v1000_v17, %v1000_v17 }
 0xa73   :  { %v1004_v21 = vsel %vm170_vm3, %v1002_v20, 0.0  ;;  %v1003_v22 = vmul.f32 %v1001_v19, %v1001_v19 }
 0xa74   :  { %1005 = vadd.xlane.f32.xlu1 %v1004_v21 }
 0xa75   :  { %v1007_v23 = vsel %vm170_vm3, %v1003_v22, 0.0 }
 0xa76   :  { %1008 = vadd.xlane.f32.xlu0 %v1007_v23 }
 0xb01   :  { %v1006_v25 = vpop.xlane.xlu1 %1005 }
 0xb02   :  { %v1010_v26 = vmul.f32 0.03125, %v1006_v25 }
 0xb03   :  { %v1009_v27 = vpop.xlane.xlu0 %1008 }
 0xb04   :  { %v1012_v28 = vadd.f32 1e-05, %v1010_v26  ;;  %v1011_v29 = vmul.f32 0.03125, %v1009_v27 }
 0xb06   :  { %2597 = vrsqrt.f32 %v1012_v28  ;;  %v1013_v30 = vadd.f32 1e-05, %v1011_v29 }
 0xb08   :  { %2599 = vrsqrt.f32 %v1013_v30 }
 0xb10   :  { %v2598_v35 = vpop.eup %2597 }
 0xb11   :  { %v1016_v37 = vmul.f32 %v2598_v35, %v1000_v17 }
 0xb12   :  { %v2600_v39 = vpop.eup %2599 }
 0xb13   :  { %v1022_v41 = vmul.f32 %v1021_v32, %v1016_v37  ;;  %v1017_v42 = vmul.f32 %v2600_v39, %v1001_v19 }
 0xb15   :  { %v1023_v44 = vmul.f32 %v1021_v32, %v1017_v42  ;;  %v3097_v45 = vadd.f32 %v1027_v43, %v1022_v41 }
 0xb17   :  { %v3099_v46 = vadd.f32 %v1027_v43, %v1023_v44 }
 0xb19   :  { %v1037_v47 = vpack.c.bf16 %v3099_v46, %v3097_v45 }
 0xb1b   :  { %2392 = vmatmul.mubr.msk.bf16.vlgmr.msra.gmra.mrb[24].mxu1 %vm170_vm3, %v1037_v47 }
 0xb1c   :  { %2397 = vmatprep.mubr.msk.bf16.mxu1 %vm2729_vm0, %v2728_v0 }
 0xbee   :  { %v1095_v49 = vpop.f32.mrb[24].mxu1 }
 0xbef   :  { %v2393_v50 = vpop.f32.mrb[25].mxu1  ;;  %v1096_v51 = vadd.f32 %v2174_v48, %v1095_v49 }
 0xbf0   :  { %v1098_v1 = vpop.f32.mrb[26].mxu1 }
 0xbf1   :  { %v1099_v52 = vadd.f32 %v2174_v48, %v1098_v1  ;;  %v2394_v53 = vpop.f32.mrb[27].mxu1 }
 0xbf3   :  { %v3109_v54 = vpack.c.bf16 %v1099_v52, %v1096_v51 }
 0xbf5   :  { %1225 = vrot.lane.b32.xlu0 %v3109_v54, %s2733_s17  ;;  %1104 = vrot.lane.b32.xlu1 %v3109_v54, %s2731_s29  ;;  %s3351_s17 = smov 16  }
 0xbf9   :  { %1344 = vrot.lane.b32.xlu0 %v3109_v54, %s2735_s19  ;;  %1223 = vrot.lane.b32.xlu1 %v3109_v54, %s2730_s28 }
 0xbfd   :  { %1465 = vrot.lane.b32.xlu0 %v3109_v54, %s2736_s20  ;;  %1346 = vrot.lane.b32.xlu1 %v3109_v54, %s2732_s15 }
 0xc01   :  { %1467 = vrot.lane.b32.xlu1 %v3109_v54, %s2734_s18 }
 0xc67   :  { %v1105_v55 = vpop.permute.xlu1 %1104  ;;  %v1226_v57 = vpop.permute.xlu0 %1225 }
 0xc68   :  { %v1110_v56 = vsel %vm219_vm4, %v1105_v55, 0  ;;  %v1231_v59 = vsel %vm219_vm4, %v1226_v57, 0 }
 0xc69   :  { %2396 = vmatpush3.bf16.xpose.msra.mxu1 %v1110_v56 }
 0xc6a   :  { %2407 = vmatprep.subr.bf16.mxu1 %v2728_v0 }
 0xc6b   :  { %v1224_v58 = vpop.permute.xlu1 %1223  ;;  %v1345_v3 = vpop.permute.xlu0 %1344 }
 0xc6f   :  { %v1347_v60 = vpop.permute.xlu1 %1346  ;;  %v1466_v5 = vpop.permute.xlu0 %1465 }
 0xc70   :  { %2398 = vmatmul.mubr.msk.bf16.vlgmr.msra.gmra.mrb[28].mxu1 %vm219_vm4, %v3109_v54  ;;  %v1352_v24 = vsel %vm219_vm4, %v1347_v60, 0 }
 0xc71   :  { %2408 = vmatpush3.bf16.xpose.msra.mxu1 %v1231_v59  ;;  %2409 = vmatprep.mubr.msk.bf16.mxu1 %vm2729_vm0, %v2728_v0 }
 0xc72   :  { %2419 = vmatprep.subr.bf16.mxu1 %v2728_v0 }
 0xc73   :  { %v1468_v2 = vpop.permute.xlu1 %1467 }
 0xc74   :  { %v1473_v4 = vsel %vm219_vm4, %v1468_v2, 0 }
 0xc78   :  { %2410 = vmatmul.mubr.msk.bf16.vlgmr.msra.gmra.mrb[32].mxu1 %vm219_vm4, %v1224_v58 }
 0xc79   :  { %2420 = vmatpush3.bf16.xpose.msra.mxu1 %v1352_v24  ;;  %2421 = vmatprep.mubr.msk.bf16.mxu1 %vm2729_vm0, %v2728_v0 }
 0xc7a   :  { %2431 = vmatprep.subr.bf16.mxu1 %v2728_v0 }
 0xc80   :  { %2422 = vmatmul.mubr.msk.bf16.vlgmr.msra.gmra.mrb[36].mxu1 %vm219_vm4, %v1345_v3 }
 0xc81   :  { %2432 = vmatpush3.bf16.xpose.msra.mxu1 %v1473_v4  ;;  %2433 = vmatprep.mubr.msk.bf16.mxu1 %vm2729_vm0, %v2728_v0 }
 0xc82   :  { %2443 = vmatprep.subr.bf16.mxu1 %v2728_v0 }
 0xc88   :  { %2434 = vmatmul.mubr.msk.bf16.vlgmr.msra.gmra.mrb[40].mxu1 %vm219_vm4, %v1466_v5 }
 0xc89   :  { %2447 = vmatprep.mubr.msk.bf16.mxu1 %vm2729_vm0, %v2728_v0 }
 0xd43   :  { %v1146_v6 = vpop.f32.mrb[28].mxu1 }
 0xd44   :  { %v1147_v7 = vadd.f32 %v1146_v6, %v2935_v36  ;;  %v2399_v8 = vpop.f32.mrb[29].mxu1 }
 0xd45   :  { %v1149_v9 = vpop.f32.mrb[30].mxu1 }
 0xd46   :  { %v1150_v10 = vadd.f32 %v1149_v9, %v2937_v38  ;;  %v2400_v11 = vpop.f32.mrb[31].mxu1  ;;  %v1153_v12 = vsel %vm267_vm5, %v1147_v7, -inf }
 0xd47   :  { %1154 = vmax.xlane.f32.xlu1 %v1153_v12 }
 0xd48   :  { %v1156_v15 = vsel %vm267_vm5, %v1150_v10, -inf }
 0xd49   :  { %1157 = vmax.xlane.f32.xlu0 %v1156_v15 }
 0xd4b   :  { %v1267_v16 = vpop.f32.mrb[32].mxu1 }
 0xd4c   :  { %v1268_v17 = vadd.f32 %v1267_v16, %v2935_v36  ;;  %v2411_v18 = vpop.f32.mrb[33].mxu1 }
 0xd4d   :  { %v1270_v19 = vpop.f32.mrb[34].mxu1 }
 0xd4e   :  { %v1271_v20 = vadd.f32 %v1270_v19, %v2937_v38  ;;  %v2412_v21 = vpop.f32.mrb[35].mxu1  ;;  %v1274_v22 = vsel %vm267_vm5, %v1268_v17, -inf }
 0xd4f   :  { %1275 = vmax.xlane.f32.xlu0 %v1274_v22 }
 0xd50   :  { %v1277_v23 = vsel %vm267_vm5, %v1271_v20, -inf }
 0xd51   :  { %1278 = vmax.xlane.f32.xlu1 %v1277_v23 }
 0xd53   :  { %v1388_v13 = vpop.f32.mrb[36].mxu1 }
 0xd54   :  { %v1389_v14 = vadd.f32 %v1388_v13, %v2935_v36  ;;  %v2423_v25 = vpop.f32.mrb[37].mxu1 }
 0xd55   :  { %v1391_v26 = vpop.f32.mrb[38].mxu1 }
 0xd56   :  { %v1392_v27 = vadd.f32 %v1391_v26, %v2937_v38  ;;  %v2424_v28 = vpop.f32.mrb[39].mxu1  ;;  %v1395_v29 = vsel %vm267_vm5, %v1389_v14, -inf }
 0xd57   :  { %1396 = vmax.xlane.f32.xlu0 %v1395_v29 }
 0xd58   :  { %v1398_v30 = vsel %vm267_vm5, %v1392_v27, -inf }
 0xd59   :  { %1399 = vmax.xlane.f32.xlu1 %v1398_v30 }
 0xd5b   :  { %v1509_v32 = vpop.f32.mrb[40].mxu1 }
 0xd5c   :  { %v1510_v35 = vadd.f32 %v1509_v32, %v2935_v36  ;;  %v2435_v37 = vpop.f32.mrb[41].mxu1 }
 0xd5d   :  { %v1512_v39 = vpop.f32.mrb[42].mxu1 }
 0xd5e   :  { %v1513_v41 = vadd.f32 %v1512_v39, %v2937_v38  ;;  %v2436_v42 = vpop.f32.mrb[43].mxu1  ;;  %v1516_v43 = vsel %vm267_vm5, %v1510_v35, -inf }
 0xd5f   :  { %1517 = vmax.xlane.f32.xlu0 %v1516_v43 }
 0xd60   :  { %v1519_v44 = vsel %vm267_vm5, %v1513_v41, -inf }
 0xd61   :  { %1520 = vmax.xlane.f32.xlu1 %v1519_v44 }
 0xdd4   :  { %v1155_v47 = vpop.xlane.xlu1 %1154 }
 0xdd5   :  { %v1159_v48 = vsub.f32 %v1147_v7, %v1155_v47 }
 0xdd6   :  { %v1158_v49 = vpop.xlane.xlu0 %1157 }
 0xdd7   :  { %v1161_v50 = vmul.f32 1.442695, %v1159_v48  ;;  %v1160_v1 = vsub.f32 %v1150_v10, %v1158_v49 }
 0xdd9   :  { %2601 = vpow2.f32 %v1161_v50  ;;  %v1163_v51 = vmul.f32 1.442695, %v1160_v1 }
 0xddb   :  { %2603 = vpow2.f32 %v1163_v51 }
 0xddc   :  { %v1276_v36 = vpop.xlane.xlu0 %1275 }
 0xddd   :  { %v1280_v52 = vsub.f32 %v1268_v17, %v1276_v36 }
 0xdde   :  { %v1279_v60 = vpop.xlane.xlu1 %1278 }
 0xddf   :  { %v1282_v53 = vmul.f32 1.442695, %v1280_v52  ;;  %v1281_v24 = vsub.f32 %v1271_v20, %v1279_v60 }
 0xde1   :  { %2605 = vpow2.f32 %v1282_v53  ;;  %v1284_v4 = vmul.f32 1.442695, %v1281_v24 }
 0xde3   :  { %v2602_v38 = vpop.eup %2601  ;;  %2607 = vpow2.f32 %v1284_v4 }
 0xde4   :  { %v1165_v55 = vsel %vm267_vm5, %v2602_v38, 0.0  ;;  %v1397_v3 = vpop.xlane.xlu0 %1396 }
 0xde5   :  { %v2604_v56 = vpop.eup %2603  ;;  %1166 = vadd.xlane.f32.xlu0 %v1165_v55  ;;  %v1401_v7 = vsub.f32 %v1389_v14, %v1397_v3 }
 0xde6   :  { %v1168_v57 = vsel %vm267_vm5, %v2604_v56, 0.0  ;;  %v1400_v2 = vpop.xlane.xlu1 %1399 }
 0xde7   :  { %1169 = vadd.xlane.f32.xlu1 %v1168_v57  ;;  %v1402_v5 = vsub.f32 %v1392_v27, %v1400_v2  ;;  %v1403_v11 = vmul.f32 1.442695, %v1401_v7 }
 0xde9   :  { %v1405_v9 = vmul.f32 1.442695, %v1402_v5 }
 0xdeb   :  { %v3164_v58 = vpop.eup %2605  ;;  %2609 = vpow2.f32 %v1405_v9 }
 0xdec   :  { %v1286_v59 = vsel %vm267_vm5, %v3164_v58, 0.0  ;;  %v1518_v8 = vpop.xlane.xlu0 %1517  ;;  %2611 = vpow2.f32 %v1403_v11 }
 0xded   :  { %1287 = vadd.xlane.f32.xlu0 %v1286_v59  ;;  %v1522_v12 = vsub.f32 %v1510_v35, %v1518_v8  ;;  %v2608_v17 = vpop.eup %2607 }
 0xdee   :  { %v1521_v6 = vpop.xlane.xlu1 %1520  ;;  %v1289_v18 = vsel %vm267_vm5, %v2608_v17, 0.0 }
 0xdef   :  { %v1523_v10 = vsub.f32 %v1513_v41, %v1521_v6  ;;  %v1524_v16 = vmul.f32 1.442695, %v1522_v12 }
 0xdf1   :  { %v1526_v15 = vmul.f32 1.442695, %v1523_v10  ;;  %v2549_v10 = vld [vmem:[%s3340_s6 + $0x10] sm:$0xff]  }
 0xdf2   :  { %2444 = vmatpush3.bf16.msra.mxu1 %v2549_v10 }
 0xdf3   :  { %2613 = vpow2.f32 %v1526_v15  ;;  %2445 = vmatprep.subr.bf16.mxu1 %v2728_v0 }
 0xdf4   :  { %2615 = vpow2.f32 %v1524_v16 }
 0xdf5   :  { %v2610_v19 = vpop.eup %2609 }
 0xdf6   :  { %v2612_v20 = vpop.eup %2611  ;;  %v1410_v21 = vsel %vm267_vm5, %v2610_v19, 0.0 }
 0xdf7   :  { %v1407_v23 = vsel %vm267_vm5, %v2612_v20, 0.0 }
 0xdf8   :  { %1297 = vrot.lane.b32.xlu1 %v3109_v54, %s2737_s1 }
 0xdfd   :  { %v3174_v22 = vpop.eup %2613 }
 0xdfe   :  { %v2616_v13 = vpop.eup %2615  ;;  %v1531_v14 = vsel %vm267_vm5, %v3174_v22, 0.0 }
 0xdff   :  { %v1528_v25 = vsel %vm267_vm5, %v2616_v13, 0.0 }
 0xe03   :  { %1176 = vrot.lane.b32.xlu0 %v3109_v54, %s2738_s16 }
 0xe1c   :  { %1290 = vadd.xlane.f32.xlu1 %v1289_v18 }
 0xe20   :  { %1411 = vadd.xlane.f32.xlu1 %v1410_v21 }
 0xe22   :  { %1408 = vadd.xlane.f32.xlu0 %v1407_v23 }
 0xe24   :  { %1532 = vadd.xlane.f32.xlu1 %v1531_v14 }
 0xe26   :  { %1529 = vadd.xlane.f32.xlu0 %v1528_v25 }
 0xe35   :  { %1418 = vrot.lane.b32.xlu1 %v3109_v54, %s2739_s25 }
 0xe3c   :  { %1539 = vrot.lane.b32.xlu0 %v3109_v54, %s2740_s3 }
 0xe72   :  { %v1167_v26 = vpop.xlane.xlu0 %1166 }
 0xe73   :  { %2617 = vrcp.f32 %v1167_v26 }
 0xe74   :  { %v1170_v27 = vpop.xlane.xlu1 %1169 }
 0xe75   :  { %2619 = vrcp.f32 %v1170_v27 }
 0xe78   :  { %v1298_v41 = vpop.permute.xlu1 %1297 }
 0xe7a   :  { %v1288_v28 = vpop.xlane.xlu0 %1287 }
 0xe7b   :  { %2621 = vrcp.f32 %v1288_v28 }
 0xe7d   :  { %v2618_v29 = vpop.eup %2617 }
 0xe7e   :  { %v1177_v30 = vpop.permute.xlu0 %1176  ;;  %v1173_v35 = vmul.f32 %v2618_v29, %v2602_v38 }
 0xe7f   :  { %v2620_v32 = vpop.eup %2619  ;;  %2402 = vmatpush3.bf16.msra.mxu0 %v1177_v30 }
 0xe80   :  { %v1174_v37 = vmul.f32 %v2620_v32, %v2604_v56  ;;  %2413 = vmatprep.subr.bf16.mxu0 %v2728_v0 }
 0xe82   :  { %v1175_v39 = vpack.c.bf16 %v1174_v37, %v1173_v35 }
 0xe84   :  { %2404 = vmatmul.mubr.msk.bf16.vlgmr.msra.gmra.mrb[28].mxu0 %vm267_vm5, %v1175_v39 }
 0xe85   :  { %2414 = vmatpush3.bf16.msra.mxu0 %v1298_v41  ;;  %2415 = vmatprep.mubr.msk.bf16.mxu0 %vm2729_vm0, %v2728_v0  ;;  %v2622_v44 = vpop.eup %2621 }
 0xe86   :  { %2425 = vmatprep.subr.bf16.mxu0 %v2728_v0  ;;  %v1294_v50 = vmul.f32 %v2622_v44, %v3164_v58 }
 0xea9   :  { %v1291_v54 = vpop.xlane.xlu1 %1290 }
 0xeaa   :  { %2623 = vrcp.f32 %v1291_v54 }
 0xead   :  { %v1412_v42 = vpop.xlane.xlu1 %1411 }
 0xeae   :  { %2625 = vrcp.f32 %v1412_v42 }
 0xeaf   :  { %v1409_v43 = vpop.xlane.xlu0 %1408 }
 0xeb0   :  { %2627 = vrcp.f32 %v1409_v43 }
 0xeb1   :  { %v1533_v47 = vpop.xlane.xlu1 %1532 }
 0xeb3   :  { %v1530_v48 = vpop.xlane.xlu0 %1529 }
 0xeb4   :  { %v2624_v49 = vpop.eup %2623  ;;  %2629 = vrcp.f32 %v1530_v48  ;;  %v3225_v48 = vld [vmem:[%s3344_s10 + $0x8] sm:$0x3f] }
 0xeb5   :  { %v1295_v1 = vmul.f32 %v2624_v49, %v2608_v17  ;;  %2631 = vrcp.f32 %v1533_v47  ;;  %v1419_v52 = vpop.permute.xlu1 %1418  ;;  %v2550_v17 = vld [vmem:[%s3340_s6 + $0x18] sm:$0xff]   ;;  %v1625_v49 = vrot.slane %v3225_v48, %v739_v63 }
 0xeb6   :  { %2446 = vmatpush3.bf16.msra.mxu1 %v2550_v17 }
 0xeb7   :  { %v1296_v51 = vpack.c.bf16 %v1295_v1, %v1294_v50  ;;  %v1540_v58 = vpop.permute.xlu0 %1539  ;;  %2459 = vmatprep.subr.bf16.mxu1 %v2728_v0 }
 0xeb8   :  { %v2626_v36 = vpop.eup %2625 }
 0xeb9   :  { %2416 = vmatmul.mubr.msk.bf16.vlgmr.msra.gmra.mrb[32].mxu0 %vm267_vm5, %v1296_v51  ;;  %v1416_v55 = vmul.f32 %v2626_v36, %v2610_v19 }
 0xeba   :  { %v2628_v53 = vpop.eup %2627  ;;  %2426 = vmatpush3.bf16.msra.mxu0 %v1419_v52  ;;  %2427 = vmatprep.mubr.msk.bf16.mxu0 %vm2729_vm0, %v2728_v0 }
 0xebb   :  { %v1415_v38 = vmul.f32 %v2628_v53, %v2612_v20  ;;  %2437 = vmatprep.subr.bf16.mxu0 %v2728_v0 }
 0xebd   :  { %v1417_v56 = vpack.c.bf16 %v1416_v55, %v1415_v38 }
 0xebe   :  { %v2630_v57 = vpop.eup %2629 }
 0xebf   :  { %v2632_v59 = vpop.eup %2631  ;;  %v1536_v60 = vmul.f32 %v2630_v57, %v2616_v13 }
 0xec0   :  { %v1537_v24 = vmul.f32 %v2632_v59, %v3174_v22 }
 0xec1   :  { %2428 = vmatmul.mubr.msk.bf16.vlgmr.msra.gmra.mrb[36].mxu0 %vm267_vm5, %v1417_v56 }
 0xec2   :  { %2438 = vmatpush3.bf16.msra.mxu0 %v1540_v58  ;;  %2439 = vmatprep.mubr.msk.bf16.mxu0 %vm2729_vm0, %v2728_v0  ;;  %v1538_v2 = vpack.c.bf16 %v1537_v24, %v1536_v60 }
 0xec3   :  { %2451 = vmatprep.subr.bf16.mxu0 %v2728_v0 }
 0xec9   :  { %2440 = vmatmul.mubr.msk.bf16.vlgmr.msra.gmra.mrb[40].mxu0 %vm267_vm5, %v1538_v2 }
 0xeca   :  { %2455 = vmatprep.mubr.msk.bf16.mxu0 %vm2729_vm0, %v2728_v0 }
 0xf57   :  { %v1216_v3 = vpop.f32.mrb[28].mxu0 }
 0xf58   :  { %v2405_v4 = vpop.f32.mrb[29].mxu0 }
 0xf59   :  { %v1219_v5 = vpop.f32.mrb[30].mxu0 }
 0xf5a   :  { %v2406_v6 = vpop.f32.mrb[31].mxu0 }
 0xf5b   :  { %v2552_v6 = vld [vmem:[%s3341_s7 + $0x18] sm:$0xff]  }
 0xf8c   :  { %v1337_v7 = vpop.f32.mrb[32].mxu0 }
 0xf8d   :  { %v2417_v8 = vpop.f32.mrb[33].mxu0 }
 0xf8e   :  { %v1340_v9 = vpop.f32.mrb[34].mxu0  ;;  %v2554_v8 = vld [vmem:[%s3343_s9 + $0x28] sm:$0xff]  }
 0xf8f   :  { %v2522_v11 = vpack.i.bf16 %v1340_v9, %v1337_v7  ;;  %v2418_v12 = vpop.f32.mrb[35].mxu0  ;;  %v2553_v7 = vld [vmem:[%s3343_s9 + $0x20] sm:$0xff]  }
 0xf91   :  { %2523 = vrot.lane.b32.xlu1 %v2522_v11, %s2726_s26  ;;  %s3352_s26 = smov 24  }
 0xf94   :  { %v1458_v15 = vpop.f32.mrb[36].mxu0 }
 0xf95   :  { %v2429_v16 = vpop.f32.mrb[37].mxu0 }
 0xf96   :  { %v1461_v18 = vpop.f32.mrb[38].mxu0 }
 0xf97   :  { %v2527_v19 = vpack.i.bf16 %v1461_v18, %v1458_v15  ;;  %v2430_v20 = vpop.f32.mrb[39].mxu0  ;;  %v1713_v18 = vrot.slane %v3225_v48, %v828_v34  ;;  %v2555_v34 = vld [vmem:[%s3343_s9 + $0x30] sm:$0xff]  }
 0xf99   :  { %2528 = vrot.lane.b32.xlu0 %v2527_v19, %s3351_s17 }
 0xf9c   :  { %v1579_v21 = vpop.f32.mrb[40].mxu0 }
 0xf9d   :  { %v2441_v22 = vpop.f32.mrb[41].mxu0 }
 0xf9e   :  { %v1582_v23 = vpop.f32.mrb[42].mxu0 }
 0xf9f   :  { %v2532_v13 = vpack.i.bf16 %v1582_v23, %v1579_v21  ;;  %v2442_v14 = vpop.f32.mrb[43].mxu0  ;;  %v1719_v23 = vrot.slane %v3225_v48, %v834_v40  ;;  %v2556_v40 = vld [vmem:[%s3343_s9 + $0x38] sm:$0xff]  }
 0xfa1   :  { %2533 = vrot.lane.b32.xlu1 %v2532_v13, %s3352_s26 }
0x1003   :  { %v2524_v25 = vpop.permute.xlu1 %2523 }
0x1004   :  { %v2526_v27 = vunpack.i.h.bf16 %v2524_v25  ;;  %v2525_v28 = vunpack.i.l.bf16 %v2524_v25 }
0x1006   :  { %v1611_v35 = vsel %vm219_vm4, %v1219_v5, %v2526_v27  ;;  %v1610_v37 = vsel %vm219_vm4, %v1216_v3, %v2525_v28  ;;  %v2198_v27 = vld [vmem:[%s3342_s8 + $0x1] ss:$0 sm:$0xff] }
0x100b   :  { %v2529_v26 = vpop.permute.xlu0 %2528 }
0x100c   :  { %v2531_v29 = vunpack.i.h.bf16 %v2529_v26  ;;  %v2530_v30 = vunpack.i.l.bf16 %v2529_v26 }
0x100e   :  { %v1613_v54 = vsel %vm267_vm5, %v1611_v35, %v2531_v29  ;;  %v1612_v42 = vsel %vm267_vm5, %v1610_v37, %v2530_v30 }
0x1013   :  { %v2534_v32 = vpop.permute.xlu1 %2533 }
0x1014   :  { %v2536_v39 = vunpack.i.h.bf16 %v2534_v32  ;;  %v2535_v41 = vunpack.i.l.bf16 %v2534_v32 }
0x1016   :  { %v1615_v43 = vsel %vm729_vm6, %v1613_v54, %v2536_v39  ;;  %v1614_v44 = vsel %vm729_vm6, %v1612_v42, %v2535_v41  ;;  %v1807_v42 = vrot.slane %v3225_v48, %v919_v61 }
0x1017   :  { %v1621_v47 = vpack.c.bf16 %v1615_v43, %v1614_v44 }
0x1019   :  { %2448 = vmatmul.mubr.msk.bf16.vlgmr.msra.gmra.mrb[44].mxu1 %vm170_vm3, %v1621_v47 }
0x101a   :  { %2467 = vmatprep.mubr.msk.bf16.mxu1 %vm2729_vm0, %v2728_v0  ;;  %2460 = vmatpush3.bf16.msra.mxu1 %v2553_v7 }
0x101b   :  { %2461 = vmatprep.subr.bf16.mxu1 %v2728_v0 }
0x101e   :  { %2462 = vmatpush3.bf16.msra.mxu1 %v2554_v8  ;;  %v1907_v8 = vrot.slane %v3225_v48, %v1020_v31  ;;  %v2215_v31 = vld [vmem:[%s3346_s12] ss:$0 sm:$0xff] }
0x101f   :  { %2463 = vmatprep.subr.bf16.mxu1 %v2728_v0 }
0x1022   :  { %2464 = vmatpush3.bf16.msra.mxu1 %v2555_v34 }
0x1023   :  { %2465 = vmatprep.subr.bf16.mxu1 %v2728_v0 }
0x1026   :  { %2466 = vmatpush3.bf16.msra.mxu1 %v2556_v40 }
0x10ec   :  { %v1675_v50 = vpop.f32.mrb[44].mxu1 }
0x10ed   :  { %v1676_v1 = vadd.f32 %v1675_v50, %v1625_v49  ;;  %v2449_v51 = vpop.f32.mrb[45].mxu1 }
0x10ee   :  { %v1678_v36 = vpop.f32.mrb[46].mxu1 }
0x10ef   :  { %v1679_v52 = vadd.f32 %v1678_v36, %v1625_v49  ;;  %v2450_v53 = vpop.f32.mrb[47].mxu1  ;;  %v1682_v38 = vadd.f32 %v1676_v1, %v3097_v45 }
0x10f1   :  { %v1684_v55 = vsel %vm170_vm3, %v1682_v38, 0.0  ;;  %v1683_v56 = vadd.f32 %v1679_v52, %v3099_v46  ;;  %v2551_v46 = vld [vmem:[%s3341_s7 + $0x10] sm:$0xff]  }
0x10f2   :  { %1685 = vadd.xlane.f32.xlu0 %v1684_v55  ;;  %2452 = vmatpush3.bf16.msra.mxu0 %v2551_v46 }
0x10f3   :  { %v1687_v57 = vsel %vm170_vm3, %v1683_v56, 0.0  ;;  %2453 = vmatprep.subr.bf16.mxu0 %v2728_v0 }
0x10f4   :  { %1688 = vadd.xlane.f32.xlu1 %v1687_v57 }
0x10f6   :  { %2454 = vmatpush3.bf16.msra.mxu0 %v2552_v6 }
0x10f7   :  { %2471 = vmatprep.subr.bf16.mxu0 %v2728_v0 }
0x117f   :  { %v1686_v58 = vpop.xlane.xlu0 %1685 }
0x1180   :  { %v1690_v59 = vmul.f32 0.03125, %v1686_v58 }
0x1181   :  { %v1689_v60 = vpop.xlane.xlu1 %1688 }
0x1182   :  { %v1692_v63 = vsub.f32 %v1682_v38, %v1690_v59  ;;  %v1691_v24 = vmul.f32 0.03125, %v1689_v60 }
0x1184   :  { %v1693_v2 = vsub.f32 %v1683_v56, %v1691_v24  ;;  %v1694_v3 = vmul.f32 %v1692_v63, %v1692_v63 }
0x1186   :  { %v1696_v4 = vsel %vm170_vm3, %v1694_v3, 0.0  ;;  %v1695_v5 = vmul.f32 %v1693_v2, %v1693_v2  ;;  %v2558_v3 = vld [vmem:[%s3345_s11 + $0x8] sm:$0xff]  }
0x1187   :  { %1697 = vadd.xlane.f32.xlu0 %v1696_v4 }
0x1188   :  { %v1699_v45 = vsel %vm170_vm3, %v1695_v5, 0.0 }
0x118b   :  { %1700 = vadd.xlane.f32.xlu0 %v1699_v45 }
0x1214   :  { %v1698_v9 = vpop.xlane.xlu0 %1697 }
0x1215   :  { %v1702_v10 = vmul.f32 0.03125, %v1698_v9 }
0x1217   :  { %v1704_v11 = vadd.f32 1e-05, %v1702_v10 }
0x1218   :  { %v1701_v12 = vpop.xlane.xlu0 %1700 }
0x1219   :  { %2633 = vrsqrt.f32 %v1704_v11  ;;  %v1703_v15 = vmul.f32 0.03125, %v1701_v12 }
0x121b   :  { %v1705_v16 = vadd.f32 1e-05, %v1703_v15 }
0x121d   :  { %2635 = vrsqrt.f32 %v1705_v16  ;;  %v1913_v16 = vrot.slane %v3225_v48, %v1026_v33 }
0x1223   :  { %v2634_v17 = vpop.eup %2633 }
0x1224   :  { %v1708_v19 = vmul.f32 %v2634_v17, %v1692_v63 }
0x1226   :  { %v1714_v21 = vmul.f32 %v1713_v18, %v1708_v19 }
0x1227   :  { %v2636_v20 = vpop.eup %2635 }
0x1228   :  { %v1709_v22 = vmul.f32 %v2636_v20, %v1693_v2  ;;  %v1720_v14 = vadd.f32 %v1719_v23, %v1714_v21  ;;  %v2557_v2 = vld [vmem:[%s3345_s11] sm:$0xff]  }
0x122a   :  { %v1715_v13 = vmul.f32 %v1713_v18, %v1709_v22 }
0x122c   :  { %v1721_v25 = vadd.f32 %v1719_v23, %v1715_v13  ;;  %v2219_v13 = vld [vmem:[%s3346_s12 + $0x1] ss:$0 sm:$0xff] }
0x122e   :  { %v1727_v26 = vpack.c.bf16 %v1721_v25, %v1720_v14 }
0x1230   :  { %2456 = vmatmul.mubr.msk.bf16.vlgmr.msra.gmra.mrb[44].mxu0 %vm170_vm3, %v1727_v26 }
0x1231   :  { %2475 = vmatprep.mubr.msk.bf16.mxu0 %vm2729_vm0, %v2728_v0  ;;  %2472 = vmatpush3.bf16.msra.mxu0 %v2557_v2 }
0x1232   :  { %2473 = vmatprep.subr.bf16.mxu0 %v2728_v0 }
0x1235   :  { %2474 = vmatpush3.bf16.msra.mxu0 %v2558_v3 }
0x1236   :  { %2479 = vmatprep.subr.bf16.mxu0 %v2728_v0 }
0x1303   :  { %v1785_v28 = vpop.f32.mrb[44].mxu0 }
0x1304   :  { %v1786_v29 = vadd.f32 %v2198_v27, %v1785_v28  ;;  %v2457_v30 = vpop.f32.mrb[45].mxu0  ;;  %v2559_v28 = vld [vmem:[%s3345_s11 + $0x10] sm:$0xff]  }
0x1305   :  { %v1788_v32 = vpop.f32.mrb[46].mxu0 }
0x1306   :  { %v1789_v35 = vadd.f32 %v2198_v27, %v1788_v32  ;;  %v2458_v37 = vpop.f32.mrb[47].mxu0  ;;  %v1792_v39 = vmax.f32 %v1786_v29, 0.0  ;;  %v2560_v29 = vld [vmem:[%s3345_s11 + $0x18] sm:$0xff]  }
0x1308   :  { %v1793_v41 = vmax.f32 %v1789_v35, 0.0 }
0x130a   :  { %v1803_v54 = vpack.c.bf16 %v1793_v41, %v1792_v39 }
0x130c   :  { %2468 = vmatmul.mubr.msk.bf16.vlgmr.msra.gmra.mrb[48].mxu1 %vm945_vm7, %v1803_v54 }
0x13df   :  { %v1869_v43 = vpop.f32.mrb[48].mxu1 }
0x13e0   :  { %v1870_v44 = vadd.f32 %v1869_v43, %v1807_v42  ;;  %v2469_v47 = vpop.f32.mrb[49].mxu1 }
0x13e1   :  { %v1872_v49 = vpop.f32.mrb[50].mxu1 }
0x13e2   :  { %v1873_v50 = vadd.f32 %v1872_v49, %v1807_v42  ;;  %v2470_v1 = vpop.f32.mrb[51].mxu1  ;;  %v1876_v51 = vadd.f32 %v1870_v44, %v1720_v14 }
0x13e4   :  { %v1878_v36 = vsel %vm170_vm3, %v1876_v51, 0.0  ;;  %v1877_v52 = vadd.f32 %v1873_v50, %v1721_v25 }
0x13e5   :  { %1879 = vadd.xlane.f32.xlu1 %v1878_v36 }
0x13e6   :  { %v1881_v53 = vsel %vm170_vm3, %v1877_v52, 0.0 }
0x13e7   :  { %1882 = vadd.xlane.f32.xlu0 %v1881_v53 }
0x1472   :  { %v1880_v38 = vpop.xlane.xlu1 %1879 }
0x1473   :  { %v1884_v55 = vmul.f32 0.03125, %v1880_v38 }
0x1474   :  { %v1883_v56 = vpop.xlane.xlu0 %1882 }
0x1475   :  { %v1886_v57 = vsub.f32 %v1876_v51, %v1884_v55  ;;  %v1885_v58 = vmul.f32 0.03125, %v1883_v56 }
0x1477   :  { %v1887_v61 = vsub.f32 %v1877_v52, %v1885_v58  ;;  %v1888_v59 = vmul.f32 %v1886_v57, %v1886_v57 }
0x1479   :  { %v1890_v60 = vsel %vm170_vm3, %v1888_v59, 0.0  ;;  %v1889_v63 = vmul.f32 %v1887_v61, %v1887_v61 }
0x147a   :  { %1891 = vadd.xlane.f32.xlu1 %v1890_v60 }
0x147b   :  { %v1893_v24 = vsel %vm170_vm3, %v1889_v63, 0.0 }
0x147c   :  { %1894 = vadd.xlane.f32.xlu0 %v1893_v24 }
0x1507   :  { %v1892_v4 = vpop.xlane.xlu1 %1891 }
0x1508   :  { %v1896_v5 = vmul.f32 0.03125, %v1892_v4 }
0x1509   :  { %v1895_v45 = vpop.xlane.xlu0 %1894 }
0x150a   :  { %v1898_v46 = vadd.f32 1e-05, %v1896_v5  ;;  %v1897_v6 = vmul.f32 0.03125, %v1895_v45 }
0x150c   :  { %2637 = vrsqrt.f32 %v1898_v46  ;;  %v1899_v7 = vadd.f32 1e-05, %v1897_v6 }
0x150e   :  { %2639 = vrsqrt.f32 %v1899_v7 }
0x1516   :  { %v2638_v9 = vpop.eup %2637 }
0x1517   :  { %v1902_v10 = vmul.f32 %v2638_v9, %v1886_v57 }
0x1518   :  { %v2640_v11 = vpop.eup %2639 }
0x1519   :  { %v1908_v12 = vmul.f32 %v1907_v8, %v1902_v10  ;;  %v1903_v15 = vmul.f32 %v2640_v11, %v1887_v61 }
0x151b   :  { %v1909_v17 = vmul.f32 %v1907_v8, %v1903_v15  ;;  %v3293_v18 = vadd.f32 %v1913_v16, %v1908_v12 }
0x151d   :  { %v3295_v19 = vadd.f32 %v1913_v16, %v1909_v17 }
0x151f   :  { %v1924_v20 = vpack.c.bf16 %v3295_v19, %v3293_v18 }
0x1521   :  { %2476 = vmatmul.mubr.msk.bf16.vlgmr.msra.gmra.mrb[48].mxu0 %vm170_vm3, %v1924_v20 }
0x1522   :  { %2483 = vmatprep.mubr.msk.bf16.mxu0 %vm2729_vm0, %v2728_v0  ;;  %2480 = vmatpush3.bf16.msra.mxu0 %v2559_v28 }
0x1523   :  { %2481 = vmatprep.subr.bf16.mxu0 %v2728_v0 }
0x1526   :  { %2482 = vmatpush3.bf16.msra.mxu0 %v2560_v29  ;;  %v2228_v29 = vld [vmem:[%s3346_s12 + $0x3] ss:$0 sm:$0xff] }
0x15f4   :  { %v1978_v62 = vpop.f32.mrb[48].mxu0 }
0x15f5   :  { %v1979_v21 = vadd.f32 %v2215_v31, %v1978_v62  ;;  %v2477_v33 = vpop.f32.mrb[49].mxu0 }
0x15f6   :  { %v1981_v48 = vpop.f32.mrb[50].mxu0 }
0x15f7   :  { %2641 = vtanh.f32 %v1979_v21  ;;  %v1982_v22 = vadd.f32 %v2215_v31, %v1981_v48  ;;  %v2478_v23 = vpop.f32.mrb[51].mxu0 }
0x15f9   :  { %2643 = vtanh.f32 %v1982_v22 }
0x1601   :  { %v2642_v14 = vpop.eup %2641 }
0x1602   :  { %v1991_v25 = vmul.f32 %v2642_v14, %v2219_v13 }
0x1603   :  { %v2644_v26 = vpop.eup %2643 }
0x1604   :  { %v1993_v34 = vsel %vm170_vm3, %v1991_v25, 0.0  ;;  %v1992_v40 = vmul.f32 %v2644_v26, %v2219_v13  ;;  %v2224_v26 = vld [vmem:[%s3346_s12 + $0x2] ss:$0 sm:$0xff] }
0x1605   :  { %1994 = vadd.xlane.f32.xlu1 %v1993_v34 }
0x1606   :  { %v1996_v27 = vsel %vm170_vm3, %v1992_v40, 0.0 }
0x1607   :  { %1997 = vadd.xlane.f32.xlu0 %v1996_v27 }
0x1692   :  { %v1995_v30 = vpop.xlane.xlu1 %1994 }
0x1693   :  { %v1999_v32 = vrot.slane %v1995_v30, 4 }
0x1694   :  { %v1998_v35 = vpop.xlane.xlu0 %1997 }
0x1695   :  { %v2000_v37 = vmax.f32 %v1995_v30, %v1999_v32  ;;  %v2005_v39 = vrot.slane %v1998_v35, 4 }
0x1697   :  { %v2001_v41 = vrot.slane %v2000_v37, 2  ;;  %v2006_v54 = vmax.f32 %v1998_v35, %v2005_v39  ;;  %v2133_v39 = vstv %s3347_s13 }
0x1699   :  { %v2002_v42 = vmax.f32 %v2000_v37, %v2001_v41  ;;  %v2007_v43 = vrot.slane %v2006_v54, 2 }
0x169b   :  { %v2003_v44 = vrot.slane %v2002_v42, 1  ;;  %v2008_v47 = vmax.f32 %v2006_v54, %v2007_v43 }
0x169d   :  { %v2004_v49 = vmax.f32 %v2002_v42, %v2003_v44  ;;  %v2009_v50 = vrot.slane %v2008_v47, 1 }
0x169f   :  { %v2011_v1 = vsub.f32 %v1995_v30, %v2004_v49  ;;  %v2010_v51 = vmax.f32 %v2008_v47, %v2009_v50 }
0x16a1   :  { %v2013_v36 = vmul.f32 1.442695, %v2011_v1  ;;  %v2012_v52 = vsub.f32 %v1998_v35, %v2010_v51 }
0x16a3   :  { %2645 = vpow2.f32 %v2013_v36  ;;  %v2015_v0 = vmul.f32 1.442695, %v2012_v52 }
0x16a5   :  { %2647 = vpow2.f32 %v2015_v0 }
0x16ad   :  { %v2646_v53 = vpop.eup %2645 }
0x16ae   :  { %v2017_v38 = vrot.slane %v2646_v53, 4 }
0x16af   :  { %v2648_v55 = vpop.eup %2647 }
0x16b0   :  { %v2018_v56 = vadd.f32 %v2646_v53, %v2017_v38  ;;  %v2023_v57 = vrot.slane %v2648_v55, 4 }
0x16b2   :  { %v2019_v58 = vrot.slane %v2018_v56, 2  ;;  %v2024_v61 = vadd.f32 %v2648_v55, %v2023_v57 }
0x16b4   :  { %v2020_v59 = vadd.f32 %v2019_v58, %v2018_v56  ;;  %v2025_v60 = vrot.slane %v2024_v61, 2 }
0x16b6   :  { %v2021_v63 = vrot.slane %v2020_v59, 1  ;;  %v2026_v24 = vadd.f32 %v2025_v60, %v2024_v61 }
0x16b8   :  { %v2022_v2 = vadd.f32 %v2021_v63, %v2020_v59  ;;  %v2027_v3 = vrot.slane %v2026_v24, 1 }
0x16ba   :  { %2649 = vrcp.f32 %v2022_v2  ;;  %v2028_v4 = vadd.f32 %v2027_v3, %v2026_v24 }
0x16bc   :  { %2651 = vrcp.f32 %v2028_v4 }
0x16c4   :  { %v2650_v5 = vpop.eup %2649 }
0x16c5   :  { %v2031_v45 = vmul.f32 %v2650_v5, %v2646_v53 }
0x16c6   :  { %v2652_v46 = vpop.eup %2651 }
0x16c7   :  { %v2032_v6 = vmul.f32 %v2652_v46, %v2648_v55  ;;  %v2033_v7 = vmul.f32 %v2031_v45, %v3293_v18 }
0x16c9   :  { %v2034_v8 = vmul.f32 %v2032_v6, %v3295_v19  ;;  %v2035_v9 = vsel %vm170_vm3, %v2033_v7, 0.0 }
0x16ca   :  { %v2036_v10 = vrot.slane %v2035_v9, 4 }
0x16cb   :  { %v2042_v11 = vsel %vm170_vm3, %v2034_v8, 0.0 }
0x16cc   :  { %v2037_v12 = vadd.f32 %v2036_v10, %v2035_v9  ;;  %v2043_v15 = vrot.slane %v2042_v11, 4 }
0x16ce   :  { %v2038_v16 = vrot.slane %v2037_v12, 2  ;;  %v2044_v17 = vadd.f32 %v2043_v15, %v2042_v11 }
0x16d0   :  { %v2039_v20 = vadd.f32 %v2038_v16, %v2037_v12  ;;  %v2045_v31 = vrot.slane %v2044_v17, 2 }
0x16d2   :  { %v2040_v62 = vrot.slane %v2039_v20, 1  ;;  %v2046_v21 = vadd.f32 %v2045_v31, %v2044_v17 }
0x16d4   :  { %v2041_v33 = vadd.f32 %v2040_v62, %v2039_v20  ;;  %v2047_v48 = vrot.slane %v2046_v21, 1 }
0x16d6   :  { %v2048_v22 = vadd.f32 %v2047_v48, %v2046_v21  ;;  %v2054_v23 = vpack.c.bf16 %v2041_v33, %v2041_v33 }
0x16d8   :  { %v2055_v18 = vpack.c.bf16 %v2048_v22, %v2048_v22  ;;  %v2062_v19 = vunpack.c.l.b16 %v2054_v23 }
0x16da   :  { %v2063_v13 = vunpack.c.l.b16 %v2055_v18 }
0x16dc   :  { %v2065_v14 = vsel %vm2064_vm8, %v2063_v13, %v2062_v19 }
0x16dd   :  { %v2066_v25 = vpack.c.b16 %v2065_v14, %v2065_v14 }
0x16df   :  { %2484 = vmatmul.mubr.msk.bf16.vlgmr.msra.gmra.mrb[52].mxu0 %vm170_vm3, %v2066_v25 }
0x17b2   :  { %v2116_v34 = vpop.f32.mrb[52].mxu0 }
0x17b3   :  { %v2117_v40 = vadd.f32 %v2224_v26, %v2116_v34  ;;  %v2485_v27 = vpop.f32.mrb[53].mxu0 }
0x17b4   :  { %v2119_v28 = vpop.f32.mrb[54].mxu0 }
0x17b5   :  { %v2122_v30 = vmax.f32 %v2117_v40, 0.0  ;;  %v2486_v32 = vpop.f32.mrb[55].mxu0 }
0x17b7   :  { %v2127_v35 = vmul.f32 %v2228_v29, %v2122_v30 }
0x17b9   :  { %v2129_v37 = vsel %vm2128_vm9, %v2127_v35, 0.0 }
0x17ba   :  { %2130 = vadd.xlane.f32.xlu1 %v2129_v37 }
0x1847   :  { %v2131_v41 = vpop.xlane.xlu1 %2130 }
0x1848   :  { %v2134_v54 = vadd.f32 %v2133_v39, %v2131_v41 }
0x184a   :  { %2136 = vst.msk [vmem:[%s3348_s14] sm:$0x3] %vm2135_vm10, %v2134_v54 }
0x184b   :  { %2141 = vsyncpa [#allocation4], 1 }
0x184c   :  { %2142 = vsyncpa [#allocation6], 1 }

</bundles_post_ra>
